<compile_context>
chip_gen: v7x
topology: tpu7x:2x2x1
jax: 0.10.0
libtpu: 0.0.40
codegen_flags: <defaults>
</compile_context>

<pallas_src>
import jax
import jax.numpy as jnp
from jax.experimental import pallas as pl
from jax.experimental.pallas import tpu as pltpu


def _lstm_fc_kernel(x_ref, wih0_ref, b0_ref, wrec_ref, wih1_ref, b1_ref,
                    wfc1_ref, bfc1_ref, wfc2_ref, bfc2_ref,
                    out_ref):
    """Whole forward pass: 2-layer LSTM recurrence + fc1/ReLU/fc2."""
    B, T, Din = x_ref.shape
    H4 = b0_ref.shape[-1]          # 4H
    H = H4 // 4

    # ---- hoisted, loop-invariant loads (bf16 recurrent weights, bias) ----
    w_rec = wrec_ref[...]                                  # (2H, 8H) bf16, blockdiag
    wih1 = wih1_ref[...]                                   # (H, 4H)  bf16
    b1 = jnp.broadcast_to(b1_ref[...], (B, H4))            # avoid per-step broadcast

    # ---- whole-sequence layer-0 input projection (f32, off serial path) ----
    x_flat = x_ref[...].reshape(B * T, Din)                # (B*T, Din)
    proj0 = (jnp.dot(x_flat, wih0_ref[...], preferred_element_type=jnp.float32)
             + b0_ref[...])                                # (B*T, 4H)
    # One-time relayout to time-major so each step reads a ready (B, 4H) slab.
    proj0_tm = jnp.swapaxes(proj0.reshape(B, T, H4), 0, 1)  # (T, B, 4H)

    def gates_to_hc(gates, c):
        # 2 full-vreg EUP passes (sigmoid/tanh over all 4 gates at once)
        s = jax.nn.sigmoid(gates)
        tg = jnp.tanh(gates)
        i = s[:, 0 * H:1 * H]
        f = s[:, 1 * H:2 * H]
        g = tg[:, 2 * H:3 * H]
        o = s[:, 3 * H:4 * H]
        c_new = f * c + i * g
        h_new = o * jnp.tanh(c_new)
        return h_new, c_new

    # ---- recurrence: state stays in vregs (f32 carries), loop unrolled ----
    h0 = jnp.zeros((B, H), jnp.float32)
    c0 = jnp.zeros((B, H), jnp.float32)
    h1 = jnp.zeros((B, H), jnp.float32)
    c1 = jnp.zeros((B, H), jnp.float32)

    # T is small & static here; for large T use lax.fori_loop(unroll=2..4)
    # with proj0_tm staged in VMEM scratch (scaling guard, not needed at T=8).
    for t in range(T):
        # fused recurrent matmul: [h0|h1] @ blockdiag(Whh0, Whh1) -> (B, 8H)
        h_cat = jnp.concatenate([h0, h1], axis=1).astype(jnp.bfloat16)   # (B, 2H)
        rec = jnp.dot(h_cat, w_rec, preferred_element_type=jnp.float32)  # (B, 8H)

        # layer 0: precomputed input projection + recurrent term
        g0 = proj0_tm[t] + rec[:, :H4]
        h0, c0 = gates_to_hc(g0, c0)

        # layer 1 (inter-layer dropout is identity at inference)
        g1 = (jnp.dot(h0.astype(jnp.bfloat16), wih1,
                      preferred_element_type=jnp.float32)
              + rec[:, H4:] + b1)
        h1, c1 = gates_to_hc(g1, c1)

    # ---- head: fc1 -> ReLU -> fc2 on last-timestep top-layer hidden (f32) ----
    z = jnp.dot(h1, wfc1_ref[...], preferred_element_type=jnp.float32) + bfc1_ref[...]
    z = jnp.maximum(z, 0.0)
    out_ref[...] = (jnp.dot(z, wfc2_ref[...], preferred_element_type=jnp.float32)
                    + bfc2_ref[...])


def lstm_forecast_forward(x, params):
    """x: (batch, seq, input_dim) float32, PyTorch batch_first convention."""
    B, T, Din = x.shape
    Dout = params["wfc2_t"].shape[1]

    vmem = pl.BlockSpec(memory_space=pltpu.MemorySpace.VMEM)
    out = pl.pallas_call(
        _lstm_fc_kernel,
        out_shape=jax.ShapeDtypeStruct((B, Dout), jnp.float32),
        in_specs=[vmem] * 10,
        out_specs=vmem,
    )(x,
      params["wih0_t"], params["b0"],
      params["w_rec_bf16"], params["wih1_bf16"], params["b1"],
      params["wfc1_t"], params["bfc1"], params["wfc2_t"], params["bfc2"])
    return out


def init_params(key, input_dim, hidden_dim, output_dim):
    """Deterministic init matching PyTorch parameter shapes (uniform +-1/sqrt(H))."""
    H = hidden_dim
    keys = jax.random.split(key, 12)
    k = 1.0 / jnp.sqrt(H)

    def u(kk, shape):
        return jax.random.uniform(kk, shape, jnp.float32, -k, k)

    # Layer 0: weight_ih_l0 (4H, Din), weight_hh_l0 (4H, H), biases (4H,)
    wih0 = u(keys[0], (4 * H, input_dim))
    whh0 = u(keys[1], (4 * H, H))
    b_ih0 = u(keys[2], (4 * H,))
    b_hh0 = u(keys[3], (4 * H,))
    # Layer 1: weight_ih_l1 (4H, H)
    wih1 = u(keys[4], (4 * H, H))
    whh1 = u(keys[5], (4 * H, H))
    b_ih1 = u(keys[6], (4 * H,))
    b_hh1 = u(keys[7], (4 * H,))
    # fc1: (H//2, H), fc2: (Dout, H//2)
    wfc1 = u(keys[8], (H // 2, H))
    bfc1 = u(keys[9], (H // 2,))
    wfc2 = u(keys[10], (output_dim, H // 2))
    bfc2 = u(keys[11], (output_dim,))

    # Fused block-diagonal recurrent weight: [h0|h1] @ W_rec = [h0@Whh0^T | h1@Whh1^T]
    w_rec = jnp.zeros((2 * H, 8 * H), jnp.float32)
    w_rec = w_rec.at[:H, :4 * H].set(whh0.T)
    w_rec = w_rec.at[H:, 4 * H:].set(whh1.T)

    return {
        # kernel-ready parameters
        "wih0_t": wih0.T, "b0": (b_ih0 + b_hh0)[None, :],
        "w_rec_bf16": w_rec.astype(jnp.bfloat16),
        "wih1_bf16": wih1.T.astype(jnp.bfloat16),
        "b1": (b_ih1 + b_hh1)[None, :],
        "wfc1_t": wfc1.T, "bfc1": bfc1[None, :],
        "wfc2_t": wfc2.T, "bfc2": bfc2[None, :],
        # full-precision per-layer copies for the reference implementation
        "whh0_t": whh0.T, "wih1_t": wih1.T, "whh1_t": whh1.T,
    }


def reference_forward(x, p):
    """Pure-JAX f32 reference of the same forward pass (for correctness check)."""
    B, T, Din = x.shape
    H = p["whh0_t"].shape[0]

    def cell(xt, h, c, wih_t, whh_t, b):
        gates = xt @ wih_t + h @ whh_t + b
        i = jax.nn.sigmoid(gates[:, 0 * H:1 * H])
        f = jax.nn.sigmoid(gates[:, 1 * H:2 * H])
        g = jnp.tanh(gates[:, 2 * H:3 * H])
        o = jax.nn.sigmoid(gates[:, 3 * H:4 * H])
        c_new = f * c + i * g
        return o * jnp.tanh(c_new), c_new

    h0 = c0 = h1 = c1 = jnp.zeros((B, H), jnp.float32)
    for t in range(T):
        h0, c0 = cell(x[:, t, :], h0, c0, p["wih0_t"], p["whh0_t"], p["b0"])
        h1, c1 = cell(h0, h1, c1, p["wih1_t"], p["whh1_t"], p["b1"])
    z = jnp.maximum(h1 @ p["wfc1_t"] + p["bfc1"], 0.0)
    return z @ p["wfc2_t"] + p["bfc2"]


if __name__ == "__main__":
    # Small shapes implied by the module: (batch, seq, input_dim), hidden, output
    batch, seq, input_dim, hidden_dim, output_dim = 2, 8, 4, 32, 1

    key = jax.random.PRNGKey(0)
    kx, kp = jax.random.split(key)
    x = jax.random.normal(kx, (batch, seq, input_dim), jnp.float32)
    params = init_params(kp, input_dim, hidden_dim, output_dim)

    out = lstm_forecast_forward(x, params)
    out = jax.block_until_ready(out)

    ref = reference_forward(x, params)
    assert out.shape == (batch, output_dim)
    # Tolerance loosened vs. v2: recurrent matmuls now use bf16 MXU operands
    # (accumulation and h/c carries remain f32).
    assert jnp.allclose(out, ref, atol=5e-2, rtol=5e-2), "mismatch vs reference"

    print("KERNEL_OK")
</pallas_src>

<mosaic_0001>
module attributes {stable_mosaic.version = 11 : i64} {
  func.func @_lstm_fc_kernel(%arg0: memref<2x8x4xf32, #tpu.memory_space<vmem>>, %arg1: memref<4x128xf32, #tpu.memory_space<vmem>>, %arg2: memref<1x128xf32, #tpu.memory_space<vmem>>, %arg3: memref<64x256xbf16, #tpu.memory_space<vmem>>, %arg4: memref<32x128xbf16, #tpu.memory_space<vmem>>, %arg5: memref<1x128xf32, #tpu.memory_space<vmem>>, %arg6: memref<32x16xf32, #tpu.memory_space<vmem>>, %arg7: memref<1x16xf32, #tpu.memory_space<vmem>>, %arg8: memref<16x1xf32, #tpu.memory_space<vmem>>, %arg9: memref<1x1xf32, #tpu.memory_space<vmem>>, %arg10: memref<2x1xf32, #tpu.memory_space<vmem>>) attributes {dimension_semantics = [], scalar_prefetch = 0 : i64, scratch_operands = 0 : i64, tpu.core_type = #tpu.core_type<tc>} {
    %c0 = arith.constant 0 : index
    %c0_0 = arith.constant 0 : index
    %0 = vector.load %arg3[%c0, %c0_0] : memref<64x256xbf16, #tpu.memory_space<vmem>>, vector<64x256xbf16>
    %c0_1 = arith.constant 0 : index
    %c0_2 = arith.constant 0 : index
    %1 = vector.load %arg4[%c0_1, %c0_2] : memref<32x128xbf16, #tpu.memory_space<vmem>>, vector<32x128xbf16>
    %c0_3 = arith.constant 0 : index
    %c0_4 = arith.constant 0 : index
    %2 = vector.load %arg5[%c0_3, %c0_4] : memref<1x128xf32, #tpu.memory_space<vmem>>, vector<1x128xf32>
    %3 = vector.shape_cast %2 : vector<1x128xf32> to vector<1x128xf32>
    %4 = vector.broadcast %3 : vector<1x128xf32> to vector<2x128xf32>
    %c0_5 = arith.constant 0 : index
    %c0_6 = arith.constant 0 : index
    %c0_7 = arith.constant 0 : index
    %5 = vector.load %arg0[%c0_5, %c0_6, %c0_7] : memref<2x8x4xf32, #tpu.memory_space<vmem>>, vector<2x8x4xf32>
    %6 = vector.shape_cast %5 : vector<2x8x4xf32> to vector<16x4xf32>
    %c0_8 = arith.constant 0 : index
    %c0_9 = arith.constant 0 : index
    %7 = vector.load %arg1[%c0_8, %c0_9] : memref<4x128xf32, #tpu.memory_space<vmem>>, vector<4x128xf32>
    %cst = arith.constant dense<0.000000e+00> : vector<16x128xf32>
    %8 = tpu.matmul %6, %7, %cst {dimension_numbers = #tpu.dot_dimension_numbers<[1], [0], [0], [1], [0, 0, 1, 1], [], []>} : vector<16x4xf32>, vector<4x128xf32>, vector<16x128xf32> -> vector<16x128xf32>
    %c0_10 = arith.constant 0 : index
    %c0_11 = arith.constant 0 : index
    %9 = vector.load %arg2[%c0_10, %c0_11] : memref<1x128xf32, #tpu.memory_space<vmem>>, vector<1x128xf32>
    %10 = vector.broadcast %9 : vector<1x128xf32> to vector<16x128xf32>
    %11 = arith.addf %8, %10 : vector<16x128xf32>
    %12 = vector.shape_cast %11 : vector<16x128xf32> to vector<2x8x128xf32>
    %13 = tpu.transpose %12, [1, 0, 2] : vector<2x8x128xf32> -> vector<8x2x128xf32>
    %cst_12 = arith.constant 0.000000e+00 : f32
    %14 = vector.broadcast %cst_12 : f32 to vector<2x32xf32>
    %cst_13 = arith.constant 0.000000e+00 : f32
    %15 = vector.broadcast %cst_13 : f32 to vector<2x32xf32>
    %cst_14 = arith.constant 0.000000e+00 : f32
    %16 = vector.broadcast %cst_14 : f32 to vector<2x32xf32>
    %cst_15 = arith.constant 0.000000e+00 : f32
    %17 = vector.broadcast %cst_15 : f32 to vector<2x32xf32>
    %18 = tpu.concatenate %14, %16 in 1 : vector<2x32xf32>, vector<2x32xf32> -> vector<2x64xf32>
    %19 = arith.truncf %18 : vector<2x64xf32> to vector<2x64xbf16>
    %cst_16 = arith.constant dense<0.000000e+00> : vector<2x256xf32>
    %20 = tpu.matmul %19, %0, %cst_16 {dimension_numbers = #tpu.dot_dimension_numbers<[1], [0], [0], [1], [0, 0, 1, 1], [], []>} : vector<2x64xbf16>, vector<64x256xbf16>, vector<2x256xf32> -> vector<2x256xf32>
    %21 = vector.extract_strided_slice %13 {offsets = [0, 0, 0], sizes = [1, 2, 128], strides = [1, 1, 1]} : vector<8x2x128xf32> to vector<1x2x128xf32>
    %22 = vector.shape_cast %21 : vector<1x2x128xf32> to vector<2x128xf32>
    %23 = vector.extract_strided_slice %20 {offsets = [0, 0], sizes = [2, 128], strides = [1, 1]} : vector<2x256xf32> to vector<2x128xf32>
    %24 = arith.addf %22, %23 : vector<2x128xf32>
    %25 = arith.negf %24 : vector<2x128xf32>
    %26 = math.exp %25 : vector<2x128xf32>
    %cst_17 = arith.constant 1.000000e+00 : f32
    %27 = vector.broadcast %cst_17 : f32 to vector<2x128xf32>
    %28 = arith.addf %27, %26 : vector<2x128xf32>
    %29 = arith.divf %27, %28 : vector<2x128xf32>
    %30 = math.tanh %24 : vector<2x128xf32>
    %31 = vector.extract_strided_slice %29 {offsets = [0, 0], sizes = [2, 32], strides = [1, 1]} : vector<2x128xf32> to vector<2x32xf32>
    %32 = vector.extract_strided_slice %29 {offsets = [0, 32], sizes = [2, 32], strides = [1, 1]} : vector<2x128xf32> to vector<2x32xf32>
    %33 = vector.extract_strided_slice %30 {offsets = [0, 64], sizes = [2, 32], strides = [1, 1]} : vector<2x128xf32> to vector<2x32xf32>
    %34 = vector.extract_strided_slice %29 {offsets = [0, 96], sizes = [2, 32], strides = [1, 1]} : vector<2x128xf32> to vector<2x32xf32>
    %35 = arith.mulf %32, %15 : vector<2x32xf32>
    %36 = arith.mulf %31, %33 : vector<2x32xf32>
    %37 = arith.addf %35, %36 : vector<2x32xf32>
    %38 = math.tanh %37 : vector<2x32xf32>
    %39 = arith.mulf %34, %38 : vector<2x32xf32>
    %40 = arith.truncf %39 : vector<2x32xf32> to vector<2x32xbf16>
    %cst_18 = arith.constant dense<0.000000e+00> : vector<2x128xf32>
    %41 = tpu.matmul %40, %1, %cst_18 {dimension_numbers = #tpu.dot_dimension_numbers<[1], [0], [0], [1], [0, 0, 1, 1], [], []>} : vector<2x32xbf16>, vector<32x128xbf16>, vector<2x128xf32> -> vector<2x128xf32>
    %42 = vector.extract_strided_slice %20 {offsets = [0, 128], sizes = [2, 128], strides = [1, 1]} : vector<2x256xf32> to vector<2x128xf32>
    %43 = arith.addf %41, %42 : vector<2x128xf32>
    %44 = arith.addf %43, %4 : vector<2x128xf32>
    %45 = arith.negf %44 : vector<2x128xf32>
    %46 = math.exp %45 : vector<2x128xf32>
    %cst_19 = arith.constant 1.000000e+00 : f32
    %47 = vector.broadcast %cst_19 : f32 to vector<2x128xf32>
    %48 = arith.addf %47, %46 : vector<2x128xf32>
    %49 = arith.divf %47, %48 : vector<2x128xf32>
    %50 = math.tanh %44 : vector<2x128xf32>
    %51 = vector.extract_strided_slice %49 {offsets = [0, 0], sizes = [2, 32], strides = [1, 1]} : vector<2x128xf32> to vector<2x32xf32>
    %52 = vector.extract_strided_slice %49 {offsets = [0, 32], sizes = [2, 32], strides = [1, 1]} : vector<2x128xf32> to vector<2x32xf32>
    %53 = vector.extract_strided_slice %50 {offsets = [0, 64], sizes = [2, 32], strides = [1, 1]} : vector<2x128xf32> to vector<2x32xf32>
    %54 = vector.extract_strided_slice %49 {offsets = [0, 96], sizes = [2, 32], strides = [1, 1]} : vector<2x128xf32> to vector<2x32xf32>
    %55 = arith.mulf %52, %17 : vector<2x32xf32>
    %56 = arith.mulf %51, %53 : vector<2x32xf32>
    %57 = arith.addf %55, %56 : vector<2x32xf32>
    %58 = math.tanh %57 : vector<2x32xf32>
    %59 = arith.mulf %54, %58 : vector<2x32xf32>
    %60 = tpu.concatenate %39, %59 in 1 : vector<2x32xf32>, vector<2x32xf32> -> vector<2x64xf32>
    %61 = arith.truncf %60 : vector<2x64xf32> to vector<2x64xbf16>
    %cst_20 = arith.constant dense<0.000000e+00> : vector<2x256xf32>
    %62 = tpu.matmul %61, %0, %cst_20 {dimension_numbers = #tpu.dot_dimension_numbers<[1], [0], [0], [1], [0, 0, 1, 1], [], []>} : vector<2x64xbf16>, vector<64x256xbf16>, vector<2x256xf32> -> vector<2x256xf32>
    %63 = vector.extract_strided_slice %13 {offsets = [1, 0, 0], sizes = [1, 2, 128], strides = [1, 1, 1]} : vector<8x2x128xf32> to vector<1x2x128xf32>
    %64 = vector.shape_cast %63 : vector<1x2x128xf32> to vector<2x128xf32>
    %65 = vector.extract_strided_slice %62 {offsets = [0, 0], sizes = [2, 128], strides = [1, 1]} : vector<2x256xf32> to vector<2x128xf32>
    %66 = arith.addf %64, %65 : vector<2x128xf32>
    %67 = arith.negf %66 : vector<2x128xf32>
    %68 = math.exp %67 : vector<2x128xf32>
    %cst_21 = arith.constant 1.000000e+00 : f32
    %69 = vector.broadcast %cst_21 : f32 to vector<2x128xf32>
    %70 = arith.addf %69, %68 : vector<2x128xf32>
    %71 = arith.divf %69, %70 : vector<2x128xf32>
    %72 = math.tanh %66 : vector<2x128xf32>
    %73 = vector.extract_strided_slice %71 {offsets = [0, 0], sizes = [2, 32], strides = [1, 1]} : vector<2x128xf32> to vector<2x32xf32>
    %74 = vector.extract_strided_slice %71 {offsets = [0, 32], sizes = [2, 32], strides = [1, 1]} : vector<2x128xf32> to vector<2x32xf32>
    %75 = vector.extract_strided_slice %72 {offsets = [0, 64], sizes = [2, 32], strides = [1, 1]} : vector<2x128xf32> to vector<2x32xf32>
    %76 = vector.extract_strided_slice %71 {offsets = [0, 96], sizes = [2, 32], strides = [1, 1]} : vector<2x128xf32> to vector<2x32xf32>
    %77 = arith.mulf %74, %37 : vector<2x32xf32>
    %78 = arith.mulf %73, %75 : vector<2x32xf32>
    %79 = arith.addf %77, %78 : vector<2x32xf32>
    %80 = math.tanh %79 : vector<2x32xf32>
    %81 = arith.mulf %76, %80 : vector<2x32xf32>
    %82 = arith.truncf %81 : vector<2x32xf32> to vector<2x32xbf16>
    %cst_22 = arith.constant dense<0.000000e+00> : vector<2x128xf32>
    %83 = tpu.matmul %82, %1, %cst_22 {dimension_numbers = #tpu.dot_dimension_numbers<[1], [0], [0], [1], [0, 0, 1, 1], [], []>} : vector<2x32xbf16>, vector<32x128xbf16>, vector<2x128xf32> -> vector<2x128xf32>
    %84 = vector.extract_strided_slice %62 {offsets = [0, 128], sizes = [2, 128], strides = [1, 1]} : vector<2x256xf32> to vector<2x128xf32>
    %85 = arith.addf %83, %84 : vector<2x128xf32>
    %86 = arith.addf %85, %4 : vector<2x128xf32>
    %87 = arith.negf %86 : vector<2x128xf32>
    %88 = math.exp %87 : vector<2x128xf32>
    %cst_23 = arith.constant 1.000000e+00 : f32
    %89 = vector.broadcast %cst_23 : f32 to vector<2x128xf32>
    %90 = arith.addf %89, %88 : vector<2x128xf32>
    %91 = arith.divf %89, %90 : vector<2x128xf32>
    %92 = math.tanh %86 : vector<2x128xf32>
    %93 = vector.extract_strided_slice %91 {offsets = [0, 0], sizes = [2, 32], strides = [1, 1]} : vector<2x128xf32> to vector<2x32xf32>
    %94 = vector.extract_strided_slice %91 {offsets = [0, 32], sizes = [2, 32], strides = [1, 1]} : vector<2x128xf32> to vector<2x32xf32>
    %95 = vector.extract_strided_slice %92 {offsets = [0, 64], sizes = [2, 32], strides = [1, 1]} : vector<2x128xf32> to vector<2x32xf32>
    %96 = vector.extract_strided_slice %91 {offsets = [0, 96], sizes = [2, 32], strides = [1, 1]} : vector<2x128xf32> to vector<2x32xf32>
    %97 = arith.mulf %94, %57 : vector<2x32xf32>
    %98 = arith.mulf %93, %95 : vector<2x32xf32>
    %99 = arith.addf %97, %98 : vector<2x32xf32>
    %100 = math.tanh %99 : vector<2x32xf32>
    %101 = arith.mulf %96, %100 : vector<2x32xf32>
    %102 = tpu.concatenate %81, %101 in 1 : vector<2x32xf32>, vector<2x32xf32> -> vector<2x64xf32>
    %103 = arith.truncf %102 : vector<2x64xf32> to vector<2x64xbf16>
    %cst_24 = arith.constant dense<0.000000e+00> : vector<2x256xf32>
    %104 = tpu.matmul %103, %0, %cst_24 {dimension_numbers = #tpu.dot_dimension_numbers<[1], [0], [0], [1], [0, 0, 1, 1], [], []>} : vector<2x64xbf16>, vector<64x256xbf16>, vector<2x256xf32> -> vector<2x256xf32>
    %105 = vector.extract_strided_slice %13 {offsets = [2, 0, 0], sizes = [1, 2, 128], strides = [1, 1, 1]} : vector<8x2x128xf32> to vector<1x2x128xf32>
    %106 = vector.shape_cast %105 : vector<1x2x128xf32> to vector<2x128xf32>
    %107 = vector.extract_strided_slice %104 {offsets = [0, 0], sizes = [2, 128], strides = [1, 1]} : vector<2x256xf32> to vector<2x128xf32>
    %108 = arith.addf %106, %107 : vector<2x128xf32>
    %109 = arith.negf %108 : vector<2x128xf32>
    %110 = math.exp %109 : vector<2x128xf32>
    %cst_25 = arith.constant 1.000000e+00 : f32
    %111 = vector.broadcast %cst_25 : f32 to vector<2x128xf32>
    %112 = arith.addf %111, %110 : vector<2x128xf32>
    %113 = arith.divf %111, %112 : vector<2x128xf32>
    %114 = math.tanh %108 : vector<2x128xf32>
    %115 = vector.extract_strided_slice %113 {offsets = [0, 0], sizes = [2, 32], strides = [1, 1]} : vector<2x128xf32> to vector<2x32xf32>
    %116 = vector.extract_strided_slice %113 {offsets = [0, 32], sizes = [2, 32], strides = [1, 1]} : vector<2x128xf32> to vector<2x32xf32>
    %117 = vector.extract_strided_slice %114 {offsets = [0, 64], sizes = [2, 32], strides = [1, 1]} : vector<2x128xf32> to vector<2x32xf32>
    %118 = vector.extract_strided_slice %113 {offsets = [0, 96], sizes = [2, 32], strides = [1, 1]} : vector<2x128xf32> to vector<2x32xf32>
    %119 = arith.mulf %116, %79 : vector<2x32xf32>
    %120 = arith.mulf %115, %117 : vector<2x32xf32>
    %121 = arith.addf %119, %120 : vector<2x32xf32>
    %122 = math.tanh %121 : vector<2x32xf32>
    %123 = arith.mulf %118, %122 : vector<2x32xf32>
    %124 = arith.truncf %123 : vector<2x32xf32> to vector<2x32xbf16>
    %cst_26 = arith.constant dense<0.000000e+00> : vector<2x128xf32>
    %125 = tpu.matmul %124, %1, %cst_26 {dimension_numbers = #tpu.dot_dimension_numbers<[1], [0], [0], [1], [0, 0, 1, 1], [], []>} : vector<2x32xbf16>, vector<32x128xbf16>, vector<2x128xf32> -> vector<2x128xf32>
    %126 = vector.extract_strided_slice %104 {offsets = [0, 128], sizes = [2, 128], strides = [1, 1]} : vector<2x256xf32> to vector<2x128xf32>
    %127 = arith.addf %125, %126 : vector<2x128xf32>
    %128 = arith.addf %127, %4 : vector<2x128xf32>
    %129 = arith.negf %128 : vector<2x128xf32>
    %130 = math.exp %129 : vector<2x128xf32>
    %cst_27 = arith.constant 1.000000e+00 : f32
    %131 = vector.broadcast %cst_27 : f32 to vector<2x128xf32>
    %132 = arith.addf %131, %130 : vector<2x128xf32>
    %133 = arith.divf %131, %132 : vector<2x128xf32>
    %134 = math.tanh %128 : vector<2x128xf32>
    %135 = vector.extract_strided_slice %133 {offsets = [0, 0], sizes = [2, 32], strides = [1, 1]} : vector<2x128xf32> to vector<2x32xf32>
    %136 = vector.extract_strided_slice %133 {offsets = [0, 32], sizes = [2, 32], strides = [1, 1]} : vector<2x128xf32> to vector<2x32xf32>
    %137 = vector.extract_strided_slice %134 {offsets = [0, 64], sizes = [2, 32], strides = [1, 1]} : vector<2x128xf32> to vector<2x32xf32>
    %138 = vector.extract_strided_slice %133 {offsets = [0, 96], sizes = [2, 32], strides = [1, 1]} : vector<2x128xf32> to vector<2x32xf32>
    %139 = arith.mulf %136, %99 : vector<2x32xf32>
    %140 = arith.mulf %135, %137 : vector<2x32xf32>
    %141 = arith.addf %139, %140 : vector<2x32xf32>
    %142 = math.tanh %141 : vector<2x32xf32>
    %143 = arith.mulf %138, %142 : vector<2x32xf32>
    %144 = tpu.concatenate %123, %143 in 1 : vector<2x32xf32>, vector<2x32xf32> -> vector<2x64xf32>
    %145 = arith.truncf %144 : vector<2x64xf32> to vector<2x64xbf16>
    %cst_28 = arith.constant dense<0.000000e+00> : vector<2x256xf32>
    %146 = tpu.matmul %145, %0, %cst_28 {dimension_numbers = #tpu.dot_dimension_numbers<[1], [0], [0], [1], [0, 0, 1, 1], [], []>} : vector<2x64xbf16>, vector<64x256xbf16>, vector<2x256xf32> -> vector<2x256xf32>
    %147 = vector.extract_strided_slice %13 {offsets = [3, 0, 0], sizes = [1, 2, 128], strides = [1, 1, 1]} : vector<8x2x128xf32> to vector<1x2x128xf32>
    %148 = vector.shape_cast %147 : vector<1x2x128xf32> to vector<2x128xf32>
    %149 = vector.extract_strided_slice %146 {offsets = [0, 0], sizes = [2, 128], strides = [1, 1]} : vector<2x256xf32> to vector<2x128xf32>
    %150 = arith.addf %148, %149 : vector<2x128xf32>
    %151 = arith.negf %150 : vector<2x128xf32>
    %152 = math.exp %151 : vector<2x128xf32>
    %cst_29 = arith.constant 1.000000e+00 : f32
    %153 = vector.broadcast %cst_29 : f32 to vector<2x128xf32>
    %154 = arith.addf %153, %152 : vector<2x128xf32>
    %155 = arith.divf %153, %154 : vector<2x128xf32>
    %156 = math.tanh %150 : vector<2x128xf32>
    %157 = vector.extract_strided_slice %155 {offsets = [0, 0], sizes = [2, 32], strides = [1, 1]} : vector<2x128xf32> to vector<2x32xf32>
    %158 = vector.extract_strided_slice %155 {offsets = [0, 32], sizes = [2, 32], strides = [1, 1]} : vector<2x128xf32> to vector<2x32xf32>
    %159 = vector.extract_strided_slice %156 {offsets = [0, 64], sizes = [2, 32], strides = [1, 1]} : vector<2x128xf32> to vector<2x32xf32>
    %160 = vector.extract_strided_slice %155 {offsets = [0, 96], sizes = [2, 32], strides = [1, 1]} : vector<2x128xf32> to vector<2x32xf32>
    %161 = arith.mulf %158, %121 : vector<2x32xf32>
    %162 = arith.mulf %157, %159 : vector<2x32xf32>
    %163 = arith.addf %161, %162 : vector<2x32xf32>
    %164 = math.tanh %163 : vector<2x32xf32>
    %165 = arith.mulf %160, %164 : vector<2x32xf32>
    %166 = arith.truncf %165 : vector<2x32xf32> to vector<2x32xbf16>
    %cst_30 = arith.constant dense<0.000000e+00> : vector<2x128xf32>
    %167 = tpu.matmul %166, %1, %cst_30 {dimension_numbers = #tpu.dot_dimension_numbers<[1], [0], [0], [1], [0, 0, 1, 1], [], []>} : vector<2x32xbf16>, vector<32x128xbf16>, vector<2x128xf32> -> vector<2x128xf32>
    %168 = vector.extract_strided_slice %146 {offsets = [0, 128], sizes = [2, 128], strides = [1, 1]} : vector<2x256xf32> to vector<2x128xf32>
    %169 = arith.addf %167, %168 : vector<2x128xf32>
    %170 = arith.addf %169, %4 : vector<2x128xf32>
    %171 = arith.negf %170 : vector<2x128xf32>
    %172 = math.exp %171 : vector<2x128xf32>
    %cst_31 = arith.constant 1.000000e+00 : f32
    %173 = vector.broadcast %cst_31 : f32 to vector<2x128xf32>
    %174 = arith.addf %173, %172 : vector<2x128xf32>
    %175 = arith.divf %173, %174 : vector<2x128xf32>
    %176 = math.tanh %170 : vector<2x128xf32>
    %177 = vector.extract_strided_slice %175 {offsets = [0, 0], sizes = [2, 32], strides = [1, 1]} : vector<2x128xf32> to vector<2x32xf32>
    %178 = vector.extract_strided_slice %175 {offsets = [0, 32], sizes = [2, 32], strides = [1, 1]} : vector<2x128xf32> to vector<2x32xf32>
    %179 = vector.extract_strided_slice %176 {offsets = [0, 64], sizes = [2, 32], strides = [1, 1]} : vector<2x128xf32> to vector<2x32xf32>
    %180 = vector.extract_strided_slice %175 {offsets = [0, 96], sizes = [2, 32], strides = [1, 1]} : vector<2x128xf32> to vector<2x32xf32>
    %181 = arith.mulf %178, %141 : vector<2x32xf32>
    %182 = arith.mulf %177, %179 : vector<2x32xf32>
    %183 = arith.addf %181, %182 : vector<2x32xf32>
    %184 = math.tanh %183 : vector<2x32xf32>
    %185 = arith.mulf %180, %184 : vector<2x32xf32>
    %186 = tpu.concatenate %165, %185 in 1 : vector<2x32xf32>, vector<2x32xf32> -> vector<2x64xf32>
    %187 = arith.truncf %186 : vector<2x64xf32> to vector<2x64xbf16>
    %cst_32 = arith.constant dense<0.000000e+00> : vector<2x256xf32>
    %188 = tpu.matmul %187, %0, %cst_32 {dimension_numbers = #tpu.dot_dimension_numbers<[1], [0], [0], [1], [0, 0, 1, 1], [], []>} : vector<2x64xbf16>, vector<64x256xbf16>, vector<2x256xf32> -> vector<2x256xf32>
    %189 = vector.extract_strided_slice %13 {offsets = [4, 0, 0], sizes = [1, 2, 128], strides = [1, 1, 1]} : vector<8x2x128xf32> to vector<1x2x128xf32>
    %190 = vector.shape_cast %189 : vector<1x2x128xf32> to vector<2x128xf32>
    %191 = vector.extract_strided_slice %188 {offsets = [0, 0], sizes = [2, 128], strides = [1, 1]} : vector<2x256xf32> to vector<2x128xf32>
    %192 = arith.addf %190, %191 : vector<2x128xf32>
    %193 = arith.negf %192 : vector<2x128xf32>
    %194 = math.exp %193 : vector<2x128xf32>
    %cst_33 = arith.constant 1.000000e+00 : f32
    %195 = vector.broadcast %cst_33 : f32 to vector<2x128xf32>
    %196 = arith.addf %195, %194 : vector<2x128xf32>
    %197 = arith.divf %195, %196 : vector<2x128xf32>
    %198 = math.tanh %192 : vector<2x128xf32>
    %199 = vector.extract_strided_slice %197 {offsets = [0, 0], sizes = [2, 32], strides = [1, 1]} : vector<2x128xf32> to vector<2x32xf32>
    %200 = vector.extract_strided_slice %197 {offsets = [0, 32], sizes = [2, 32], strides = [1, 1]} : vector<2x128xf32> to vector<2x32xf32>
    %201 = vector.extract_strided_slice %198 {offsets = [0, 64], sizes = [2, 32], strides = [1, 1]} : vector<2x128xf32> to vector<2x32xf32>
    %202 = vector.extract_strided_slice %197 {offsets = [0, 96], sizes = [2, 32], strides = [1, 1]} : vector<2x128xf32> to vector<2x32xf32>
    %203 = arith.mulf %200, %163 : vector<2x32xf32>
    %204 = arith.mulf %199, %201 : vector<2x32xf32>
    %205 = arith.addf %203, %204 : vector<2x32xf32>
    %206 = math.tanh %205 : vector<2x32xf32>
    %207 = arith.mulf %202, %206 : vector<2x32xf32>
    %208 = arith.truncf %207 : vector<2x32xf32> to vector<2x32xbf16>
    %cst_34 = arith.constant dense<0.000000e+00> : vector<2x128xf32>
    %209 = tpu.matmul %208, %1, %cst_34 {dimension_numbers = #tpu.dot_dimension_numbers<[1], [0], [0], [1], [0, 0, 1, 1], [], []>} : vector<2x32xbf16>, vector<32x128xbf16>, vector<2x128xf32> -> vector<2x128xf32>
    %210 = vector.extract_strided_slice %188 {offsets = [0, 128], sizes = [2, 128], strides = [1, 1]} : vector<2x256xf32> to vector<2x128xf32>
    %211 = arith.addf %209, %210 : vector<2x128xf32>
    %212 = arith.addf %211, %4 : vector<2x128xf32>
    %213 = arith.negf %212 : vector<2x128xf32>
    %214 = math.exp %213 : vector<2x128xf32>
    %cst_35 = arith.constant 1.000000e+00 : f32
    %215 = vector.broadcast %cst_35 : f32 to vector<2x128xf32>
    %216 = arith.addf %215, %214 : vector<2x128xf32>
    %217 = arith.divf %215, %216 : vector<2x128xf32>
    %218 = math.tanh %212 : vector<2x128xf32>
    %219 = vector.extract_strided_slice %217 {offsets = [0, 0], sizes = [2, 32], strides = [1, 1]} : vector<2x128xf32> to vector<2x32xf32>
    %220 = vector.extract_strided_slice %217 {offsets = [0, 32], sizes = [2, 32], strides = [1, 1]} : vector<2x128xf32> to vector<2x32xf32>
    %221 = vector.extract_strided_slice %218 {offsets = [0, 64], sizes = [2, 32], strides = [1, 1]} : vector<2x128xf32> to vector<2x32xf32>
    %222 = vector.extract_strided_slice %217 {offsets = [0, 96], sizes = [2, 32], strides = [1, 1]} : vector<2x128xf32> to vector<2x32xf32>
    %223 = arith.mulf %220, %183 : vector<2x32xf32>
    %224 = arith.mulf %219, %221 : vector<2x32xf32>
    %225 = arith.addf %223, %224 : vector<2x32xf32>
    %226 = math.tanh %225 : vector<2x32xf32>
    %227 = arith.mulf %222, %226 : vector<2x32xf32>
    %228 = tpu.concatenate %207, %227 in 1 : vector<2x32xf32>, vector<2x32xf32> -> vector<2x64xf32>
    %229 = arith.truncf %228 : vector<2x64xf32> to vector<2x64xbf16>
    %cst_36 = arith.constant dense<0.000000e+00> : vector<2x256xf32>
    %230 = tpu.matmul %229, %0, %cst_36 {dimension_numbers = #tpu.dot_dimension_numbers<[1], [0], [0], [1], [0, 0, 1, 1], [], []>} : vector<2x64xbf16>, vector<64x256xbf16>, vector<2x256xf32> -> vector<2x256xf32>
    %231 = vector.extract_strided_slice %13 {offsets = [5, 0, 0], sizes = [1, 2, 128], strides = [1, 1, 1]} : vector<8x2x128xf32> to vector<1x2x128xf32>
    %232 = vector.shape_cast %231 : vector<1x2x128xf32> to vector<2x128xf32>
    %233 = vector.extract_strided_slice %230 {offsets = [0, 0], sizes = [2, 128], strides = [1, 1]} : vector<2x256xf32> to vector<2x128xf32>
    %234 = arith.addf %232, %233 : vector<2x128xf32>
    %235 = arith.negf %234 : vector<2x128xf32>
    %236 = math.exp %235 : vector<2x128xf32>
    %cst_37 = arith.constant 1.000000e+00 : f32
    %237 = vector.broadcast %cst_37 : f32 to vector<2x128xf32>
    %238 = arith.addf %237, %236 : vector<2x128xf32>
    %239 = arith.divf %237, %238 : vector<2x128xf32>
    %240 = math.tanh %234 : vector<2x128xf32>
    %241 = vector.extract_strided_slice %239 {offsets = [0, 0], sizes = [2, 32], strides = [1, 1]} : vector<2x128xf32> to vector<2x32xf32>
    %242 = vector.extract_strided_slice %239 {offsets = [0, 32], sizes = [2, 32], strides = [1, 1]} : vector<2x128xf32> to vector<2x32xf32>
    %243 = vector.extract_strided_slice %240 {offsets = [0, 64], sizes = [2, 32], strides = [1, 1]} : vector<2x128xf32> to vector<2x32xf32>
    %244 = vector.extract_strided_slice %239 {offsets = [0, 96], sizes = [2, 32], strides = [1, 1]} : vector<2x128xf32> to vector<2x32xf32>
    %245 = arith.mulf %242, %205 : vector<2x32xf32>
    %246 = arith.mulf %241, %243 : vector<2x32xf32>
    %247 = arith.addf %245, %246 : vector<2x32xf32>
    %248 = math.tanh %247 : vector<2x32xf32>
    %249 = arith.mulf %244, %248 : vector<2x32xf32>
    %250 = arith.truncf %249 : vector<2x32xf32> to vector<2x32xbf16>
    %cst_38 = arith.constant dense<0.000000e+00> : vector<2x128xf32>
    %251 = tpu.matmul %250, %1, %cst_38 {dimension_numbers = #tpu.dot_dimension_numbers<[1], [0], [0], [1], [0, 0, 1, 1], [], []>} : vector<2x32xbf16>, vector<32x128xbf16>, vector<2x128xf32> -> vector<2x128xf32>
    %252 = vector.extract_strided_slice %230 {offsets = [0, 128], sizes = [2, 128], strides = [1, 1]} : vector<2x256xf32> to vector<2x128xf32>
    %253 = arith.addf %251, %252 : vector<2x128xf32>
    %254 = arith.addf %253, %4 : vector<2x128xf32>
    %255 = arith.negf %254 : vector<2x128xf32>
    %256 = math.exp %255 : vector<2x128xf32>
    %cst_39 = arith.constant 1.000000e+00 : f32
    %257 = vector.broadcast %cst_39 : f32 to vector<2x128xf32>
    %258 = arith.addf %257, %256 : vector<2x128xf32>
    %259 = arith.divf %257, %258 : vector<2x128xf32>
    %260 = math.tanh %254 : vector<2x128xf32>
    %261 = vector.extract_strided_slice %259 {offsets = [0, 0], sizes = [2, 32], strides = [1, 1]} : vector<2x128xf32> to vector<2x32xf32>
    %262 = vector.extract_strided_slice %259 {offsets = [0, 32], sizes = [2, 32], strides = [1, 1]} : vector<2x128xf32> to vector<2x32xf32>
    %263 = vector.extract_strided_slice %260 {offsets = [0, 64], sizes = [2, 32], strides = [1, 1]} : vector<2x128xf32> to vector<2x32xf32>
    %264 = vector.extract_strided_slice %259 {offsets = [0, 96], sizes = [2, 32], strides = [1, 1]} : vector<2x128xf32> to vector<2x32xf32>
    %265 = arith.mulf %262, %225 : vector<2x32xf32>
    %266 = arith.mulf %261, %263 : vector<2x32xf32>
    %267 = arith.addf %265, %266 : vector<2x32xf32>
    %268 = math.tanh %267 : vector<2x32xf32>
    %269 = arith.mulf %264, %268 : vector<2x32xf32>
    %270 = tpu.concatenate %249, %269 in 1 : vector<2x32xf32>, vector<2x32xf32> -> vector<2x64xf32>
    %271 = arith.truncf %270 : vector<2x64xf32> to vector<2x64xbf16>
    %cst_40 = arith.constant dense<0.000000e+00> : vector<2x256xf32>
    %272 = tpu.matmul %271, %0, %cst_40 {dimension_numbers = #tpu.dot_dimension_numbers<[1], [0], [0], [1], [0, 0, 1, 1], [], []>} : vector<2x64xbf16>, vector<64x256xbf16>, vector<2x256xf32> -> vector<2x256xf32>
    %273 = vector.extract_strided_slice %13 {offsets = [6, 0, 0], sizes = [1, 2, 128], strides = [1, 1, 1]} : vector<8x2x128xf32> to vector<1x2x128xf32>
    %274 = vector.shape_cast %273 : vector<1x2x128xf32> to vector<2x128xf32>
    %275 = vector.extract_strided_slice %272 {offsets = [0, 0], sizes = [2, 128], strides = [1, 1]} : vector<2x256xf32> to vector<2x128xf32>
    %276 = arith.addf %274, %275 : vector<2x128xf32>
    %277 = arith.negf %276 : vector<2x128xf32>
    %278 = math.exp %277 : vector<2x128xf32>
    %cst_41 = arith.constant 1.000000e+00 : f32
    %279 = vector.broadcast %cst_41 : f32 to vector<2x128xf32>
    %280 = arith.addf %279, %278 : vector<2x128xf32>
    %281 = arith.divf %279, %280 : vector<2x128xf32>
    %282 = math.tanh %276 : vector<2x128xf32>
    %283 = vector.extract_strided_slice %281 {offsets = [0, 0], sizes = [2, 32], strides = [1, 1]} : vector<2x128xf32> to vector<2x32xf32>
    %284 = vector.extract_strided_slice %281 {offsets = [0, 32], sizes = [2, 32], strides = [1, 1]} : vector<2x128xf32> to vector<2x32xf32>
    %285 = vector.extract_strided_slice %282 {offsets = [0, 64], sizes = [2, 32], strides = [1, 1]} : vector<2x128xf32> to vector<2x32xf32>
    %286 = vector.extract_strided_slice %281 {offsets = [0, 96], sizes = [2, 32], strides = [1, 1]} : vector<2x128xf32> to vector<2x32xf32>
    %287 = arith.mulf %284, %247 : vector<2x32xf32>
    %288 = arith.mulf %283, %285 : vector<2x32xf32>
    %289 = arith.addf %287, %288 : vector<2x32xf32>
    %290 = math.tanh %289 : vector<2x32xf32>
    %291 = arith.mulf %286, %290 : vector<2x32xf32>
    %292 = arith.truncf %291 : vector<2x32xf32> to vector<2x32xbf16>
    %cst_42 = arith.constant dense<0.000000e+00> : vector<2x128xf32>
    %293 = tpu.matmul %292, %1, %cst_42 {dimension_numbers = #tpu.dot_dimension_numbers<[1], [0], [0], [1], [0, 0, 1, 1], [], []>} : vector<2x32xbf16>, vector<32x128xbf16>, vector<2x128xf32> -> vector<2x128xf32>
    %294 = vector.extract_strided_slice %272 {offsets = [0, 128], sizes = [2, 128], strides = [1, 1]} : vector<2x256xf32> to vector<2x128xf32>
    %295 = arith.addf %293, %294 : vector<2x128xf32>
    %296 = arith.addf %295, %4 : vector<2x128xf32>
    %297 = arith.negf %296 : vector<2x128xf32>
    %298 = math.exp %297 : vector<2x128xf32>
    %cst_43 = arith.constant 1.000000e+00 : f32
    %299 = vector.broadcast %cst_43 : f32 to vector<2x128xf32>
    %300 = arith.addf %299, %298 : vector<2x128xf32>
    %301 = arith.divf %299, %300 : vector<2x128xf32>
    %302 = math.tanh %296 : vector<2x128xf32>
    %303 = vector.extract_strided_slice %301 {offsets = [0, 0], sizes = [2, 32], strides = [1, 1]} : vector<2x128xf32> to vector<2x32xf32>
    %304 = vector.extract_strided_slice %301 {offsets = [0, 32], sizes = [2, 32], strides = [1, 1]} : vector<2x128xf32> to vector<2x32xf32>
    %305 = vector.extract_strided_slice %302 {offsets = [0, 64], sizes = [2, 32], strides = [1, 1]} : vector<2x128xf32> to vector<2x32xf32>
    %306 = vector.extract_strided_slice %301 {offsets = [0, 96], sizes = [2, 32], strides = [1, 1]} : vector<2x128xf32> to vector<2x32xf32>
    %307 = arith.mulf %304, %267 : vector<2x32xf32>
    %308 = arith.mulf %303, %305 : vector<2x32xf32>
    %309 = arith.addf %307, %308 : vector<2x32xf32>
    %310 = math.tanh %309 : vector<2x32xf32>
    %311 = arith.mulf %306, %310 : vector<2x32xf32>
    %312 = tpu.concatenate %291, %311 in 1 : vector<2x32xf32>, vector<2x32xf32> -> vector<2x64xf32>
    %313 = arith.truncf %312 : vector<2x64xf32> to vector<2x64xbf16>
    %cst_44 = arith.constant dense<0.000000e+00> : vector<2x256xf32>
    %314 = tpu.matmul %313, %0, %cst_44 {dimension_numbers = #tpu.dot_dimension_numbers<[1], [0], [0], [1], [0, 0, 1, 1], [], []>} : vector<2x64xbf16>, vector<64x256xbf16>, vector<2x256xf32> -> vector<2x256xf32>
    %315 = vector.extract_strided_slice %13 {offsets = [7, 0, 0], sizes = [1, 2, 128], strides = [1, 1, 1]} : vector<8x2x128xf32> to vector<1x2x128xf32>
    %316 = vector.shape_cast %315 : vector<1x2x128xf32> to vector<2x128xf32>
    %317 = vector.extract_strided_slice %314 {offsets = [0, 0], sizes = [2, 128], strides = [1, 1]} : vector<2x256xf32> to vector<2x128xf32>
    %318 = arith.addf %316, %317 : vector<2x128xf32>
    %319 = arith.negf %318 : vector<2x128xf32>
    %320 = math.exp %319 : vector<2x128xf32>
    %cst_45 = arith.constant 1.000000e+00 : f32
    %321 = vector.broadcast %cst_45 : f32 to vector<2x128xf32>
    %322 = arith.addf %321, %320 : vector<2x128xf32>
    %323 = arith.divf %321, %322 : vector<2x128xf32>
    %324 = math.tanh %318 : vector<2x128xf32>
    %325 = vector.extract_strided_slice %323 {offsets = [0, 0], sizes = [2, 32], strides = [1, 1]} : vector<2x128xf32> to vector<2x32xf32>
    %326 = vector.extract_strided_slice %323 {offsets = [0, 32], sizes = [2, 32], strides = [1, 1]} : vector<2x128xf32> to vector<2x32xf32>
    %327 = vector.extract_strided_slice %324 {offsets = [0, 64], sizes = [2, 32], strides = [1, 1]} : vector<2x128xf32> to vector<2x32xf32>
    %328 = vector.extract_strided_slice %323 {offsets = [0, 96], sizes = [2, 32], strides = [1, 1]} : vector<2x128xf32> to vector<2x32xf32>
    %329 = arith.mulf %326, %289 : vector<2x32xf32>
    %330 = arith.mulf %325, %327 : vector<2x32xf32>
    %331 = arith.addf %329, %330 : vector<2x32xf32>
    %332 = math.tanh %331 : vector<2x32xf32>
    %333 = arith.mulf %328, %332 : vector<2x32xf32>
    %334 = arith.truncf %333 : vector<2x32xf32> to vector<2x32xbf16>
    %cst_46 = arith.constant dense<0.000000e+00> : vector<2x128xf32>
    %335 = tpu.matmul %334, %1, %cst_46 {dimension_numbers = #tpu.dot_dimension_numbers<[1], [0], [0], [1], [0, 0, 1, 1], [], []>} : vector<2x32xbf16>, vector<32x128xbf16>, vector<2x128xf32> -> vector<2x128xf32>
    %336 = vector.extract_strided_slice %314 {offsets = [0, 128], sizes = [2, 128], strides = [1, 1]} : vector<2x256xf32> to vector<2x128xf32>
    %337 = arith.addf %335, %336 : vector<2x128xf32>
    %338 = arith.addf %337, %4 : vector<2x128xf32>
    %339 = arith.negf %338 : vector<2x128xf32>
    %340 = math.exp %339 : vector<2x128xf32>
    %cst_47 = arith.constant 1.000000e+00 : f32
    %341 = vector.broadcast %cst_47 : f32 to vector<2x128xf32>
    %342 = arith.addf %341, %340 : vector<2x128xf32>
    %343 = arith.divf %341, %342 : vector<2x128xf32>
    %344 = math.tanh %338 : vector<2x128xf32>
    %345 = vector.extract_strided_slice %343 {offsets = [0, 0], sizes = [2, 32], strides = [1, 1]} : vector<2x128xf32> to vector<2x32xf32>
    %346 = vector.extract_strided_slice %343 {offsets = [0, 32], sizes = [2, 32], strides = [1, 1]} : vector<2x128xf32> to vector<2x32xf32>
    %347 = vector.extract_strided_slice %344 {offsets = [0, 64], sizes = [2, 32], strides = [1, 1]} : vector<2x128xf32> to vector<2x32xf32>
    %348 = vector.extract_strided_slice %343 {offsets = [0, 96], sizes = [2, 32], strides = [1, 1]} : vector<2x128xf32> to vector<2x32xf32>
    %349 = arith.mulf %346, %309 : vector<2x32xf32>
    %350 = arith.mulf %345, %347 : vector<2x32xf32>
    %351 = arith.addf %349, %350 : vector<2x32xf32>
    %352 = math.tanh %351 : vector<2x32xf32>
    %353 = arith.mulf %348, %352 : vector<2x32xf32>
    %c0_48 = arith.constant 0 : index
    %c0_49 = arith.constant 0 : index
    %354 = vector.load %arg6[%c0_48, %c0_49] : memref<32x16xf32, #tpu.memory_space<vmem>>, vector<32x16xf32>
    %cst_50 = arith.constant dense<0.000000e+00> : vector<2x16xf32>
    %355 = tpu.matmul %353, %354, %cst_50 {dimension_numbers = #tpu.dot_dimension_numbers<[1], [0], [0], [1], [0, 0, 1, 1], [], []>} : vector<2x32xf32>, vector<32x16xf32>, vector<2x16xf32> -> vector<2x16xf32>
    %c0_51 = arith.constant 0 : index
    %c0_52 = arith.constant 0 : index
    %356 = vector.load %arg7[%c0_51, %c0_52] : memref<1x16xf32, #tpu.memory_space<vmem>>, vector<1x16xf32>
    %357 = vector.broadcast %356 : vector<1x16xf32> to vector<2x16xf32>
    %358 = arith.addf %355, %357 : vector<2x16xf32>
    %cst_53 = arith.constant 0.000000e+00 : f32
    %359 = vector.broadcast %cst_53 : f32 to vector<2x16xf32>
    %360 = arith.maximumf %358, %359 : vector<2x16xf32>
    %c0_54 = arith.constant 0 : index
    %c0_55 = arith.constant 0 : index
    %361 = vector.load %arg8[%c0_54, %c0_55] : memref<16x1xf32, #tpu.memory_space<vmem>>, vector<16x1xf32>
    %cst_56 = arith.constant dense<0.000000e+00> : vector<2x1xf32>
    %362 = tpu.matmul %360, %361, %cst_56 {dimension_numbers = #tpu.dot_dimension_numbers<[1], [0], [0], [1], [0, 0, 1, 1], [], []>} : vector<2x16xf32>, vector<16x1xf32>, vector<2x1xf32> -> vector<2x1xf32>
    %c0_57 = arith.constant 0 : index
    %c0_58 = arith.constant 0 : index
    %363 = vector.load %arg9[%c0_57, %c0_58] : memref<1x1xf32, #tpu.memory_space<vmem>>, vector<1x1xf32>
    %364 = vector.broadcast %363 : vector<1x1xf32> to vector<2x1xf32>
    %365 = arith.addf %362, %364 : vector<2x1xf32>
    %c0_59 = arith.constant 0 : index
    %c0_60 = arith.constant 0 : index
    %366 = vector.load %arg10[%c0_59, %c0_60] : memref<2x1xf32, #tpu.memory_space<vmem>>, vector<2x1xf32>
    tpu.vector_store %arg10[%c0_59, %c0_60], %365 {strides = array<i32>} : memref<2x1xf32, #tpu.memory_space<vmem>>, vector<2x1xf32>,
    return
  }
}

</mosaic_0001>

<bundles_post_ra>
// kernel: tpu_custom_call.1
= control target key start
LH: loop header
LB: loop body
LE: loop exit
PB: predicated region body
PF: predicated region fallthrough
CT: control target
= control target key end

     0   :  { %vm74_vm0 = vcmask 1043456   ;;  %v1987_v1 = vmov 0   ;;  %vm67_vm1 = vcmask 31744   ;;  %v1988_v12 = vmov 0.0|0.0   ;;  %s1993_s15 = smov 32   ;;  %s2468_s3 = inlined_call_operand.vmem [shape: bf16[64,256], index: 3, kind: input, shape index: {}]   ;;  %s2469_s1 = inlined_call_operand.vmem [shape: f32[4,128], index: 1, kind: input, shape index: {}]   ;;  %s2470_s0 = inlined_call_operand.vmem [shape: f32[2,8,4], index: 0, kind: input, shape index: {}]   ;;  %s2471_s2 = inlined_call_operand.vmem [shape: f32[1,128], index: 2, kind: input, shape index: {}]   ;;  %s2472_s4 = inlined_call_operand.vmem [shape: bf16[32,128], index: 4, kind: input, shape index: {}]   ;;  %s2473_s5 = inlined_call_operand.vmem [shape: f32[1,128], index: 5, kind: input, shape index: {}]   ;;  %s2474_s6 = inlined_call_operand.vmem [shape: f32[32,16], index: 6, kind: input, shape index: {}]   ;;  %s2475_s8 = inlined_call_operand.vmem [shape: f32[16,1], index: 8, kind: input, shape index: {}]   ;;  %s2476_s9 = inlined_call_operand.<no memory space> [shape: f32[1,1], index: 9, kind: input, shape index: {}]   ;;  %s2477_s7 = inlined_call_operand.vmem [shape: f32[1,16], index: 7, kind: input, shape index: {}]   ;;  %s2478_s10 = inlined_call_operand.vmem [shape: f32[2,1], index: 10, kind: output, shape index: {}]  }
   0x1   :  { %v2053_v0 = vld [vmem:[%s2468_s3 + $0x4] ss:$8 sps:$4 sm:$0xff]   ;;  %296 = vmatprep.mubr.bf16.mxu1 %v1987_v1  ;;  %v2059_v2 = vld [vmem:[%s2468_s3] ss:$8 sps:$4 sm:$0xff]   ;;  %v2068_v4 = vld [vmem:[%s2468_s3 + $0x14] ss:$8 sps:$4 sm:$0xff]   ;;  %v157_v16 = vlaneseq }
   0x2   :  { %v59_v3 = vld [vmem:[%s2469_s1] sm:$0xf]  ;;  %264 = vmatprep.subr.bf16.mxu1 %v2053_v0  ;;  %v58_v6 = vld [vmem:[%s2470_s0 + $0x8] sm:$0xff]  ;;  %v2080_v7 = vld [vmem:[%s2468_s3 + $0x10] ss:$8 sps:$4 sm:$0xff]   ;;  %v1989_v13 = vmov 0.0  }
   0x3   :  { %1733 = vmatprep.subr.msk.mxu0 %vm74_vm0, %v59_v3  ;;  %v57_v5 = vld [vmem:[%s2470_s0] sm:$0xff]  ;;  %265 = vmatpush1.bf16.msra.mxu1 %v2059_v2  ;;  %v2098_v10 = vld [vmem:[%s2468_s3 + $0x34] ss:$8 sps:$4 sm:$0xff]   ;;  %v2104_v11 = vld [vmem:[%s2468_s3 + $0x30] ss:$8 sps:$4 sm:$0xff]   ;;  %v158_v18 = vshrl.u32 %v157_v16, 7 }
   0x4   :  { %1734 = vmatpush3.msk.msra.mxu0 %vm74_vm0, %v59_v3  ;;  %266 = vmatprep.subr.bf16.mxu1 %v2068_v4  ;;  %v2086_v8 = vld [vmem:[%s2468_s3 + $0x24] ss:$8 sps:$4 sm:$0xff]   ;;  %v2092_v9 = vld [vmem:[%s2468_s3 + $0x20] ss:$8 sps:$4 sm:$0xff]   ;;  %v1990_v14 = vmov 1983009808  }
   0x5   :  { %1735 = vmatprep.mubr.msk.f32.mxu0 %vm67_vm1, %v57_v5  ;;  %1738 = vmatprep.subr.bf16.mxu0 %v1989_v13  ;;  %v155_v15 = vunpack.c.l.s4 %v1990_v14  ;;  %v1991_v19 = vmov 1934713408   ;;  %v1649_v21 = vld [vmem:[%s2471_s2] ss:$0 sm:$0xff]  ;;  %s1992_s2 = smov 64   ;;  %vm1994_vm2 = vmmov 0  }
   0x6   :  { %1736 = vmatmul.mubr.msk.f32.vlgmr.msra.gmra.mrb[0].mxu0 %vm67_vm1, %v58_v6  ;;  %v186_v20 = vunpack.c.l.s4 %v1991_v19  ;;  %v2133_v58 = vld [vmem:[%s2472_s4] sm:$0xff]   ;;  %v2143_v59 = vld [vmem:[%s2472_s4 + $0x8] sm:$0xff]   ;;  %vm346_vm3 = vcmask 261120   ;;  %vm260_vm4 = vcmask 523264   ;;  %vm1568_vm5 = vcmask 130048  }
   0x7   :  { %267 = vmatpush1.bf16.msra.mxu1 %v2080_v7  ;;  %v156_v17 = vunpack.c.0.s8 %v155_v15  ;;  %1742 = vmatprep.mubr.msk.bf16.mxu0 %vm1994_vm2, %v1989_v13  ;;  %v2167_v5 = vld [vmem:[%s2473_s5] ss:$0 sm:$0xff]  ;;  %vm1642_vm6 = vcmask 1024  }
   0x8   :  { %268 = vmatprep.subr.bf16.mxu1 %v2086_v8  ;;  %v187_v24 = vunpack.c.0.s8 %v186_v20  ;;  %1739 = vmatpush3.bf16.msra.mxu0 %v2133_v58 }
   0x9   :  { %v159_v22 = vsub.s32 %v156_v17, %v158_v18  ;;  %1740 = vmatprep.subr.bf16.mxu0 %v1989_v13 }
   0xa   :  { %v190_v32 = vsub.s32 %v187_v24, %v158_v18 }
   0xb   :  { %269 = vmatpush1.bf16.msra.mxu1 %v2092_v9 }
   0xc   :  { %270 = vmatprep.subr.bf16.mxu1 %v2098_v10  ;;  %1741 = vmatpush3.bf16.msra.mxu0 %v2143_v59 }
   0xd   :  { %428 = vmatprep.subr.bf16.mxu0 %v2053_v0 }
   0xf   :  { %271 = vmatpush1.bf16.msra.mxu1 %v2104_v11 }
  0x10   :  { %1746 = vmatprep.subr.bf16.mxu1 %v1989_v13 }
  0x12   :  { %297 = vmatmul.mubr.bf16.vlgmr.msra.gmra.mrb[0].mxu1 %v1988_v12 }
  0x13   :  { %1750 = vmatprep.mubr.msk.bf16.mxu1 %vm1994_vm2, %v1989_v13  ;;  %1747 = vmatpush3.bf16.msra.mxu1 %v2133_v58 }
  0x14   :  { %1748 = vmatprep.subr.bf16.mxu1 %v1989_v13 }
  0x17   :  { %1749 = vmatpush3.bf16.msra.mxu1 %v2143_v59 }
  0x18   :  { %579 = vmatprep.subr.bf16.mxu1 %v2053_v0 }
  0xd9   :  { %v1737_v23 = vpop.f32.mrb[0].mxu0 }
  0xda   :  { %v150_v25 = vadd.f32 %v1737_v23, %v1649_v21  ;;  %v144_v26 = vpop.f32.mrb[1].mxu0 }
  0xdb   :  { %v145_v27 = vadd.f32 %v1649_v21, %v144_v26 }
  0xdc   :  { %v168_v28 = vcombine.high %v150_v25, %v1989_v13  ;;  %v175_v29 = vrot.slane %v150_v25, %v159_v22 }
  0xdd   :  { %v153_v30 = vcombine.high %v145_v27, %v1989_v13  ;;  %v160_v31 = vrot.slane %v145_v27, %v159_v22 }
  0xde   :  { %v182_v33 = vrot.slane %v168_v28, %v159_v22 }
  0xdf   :  { %v167_v34 = vrot.slane %v153_v30, %v159_v22  ;;  %v183_v35 = vcombine.low %v160_v31, %v175_v29  ;;  %v184_v36 = vcombine.high %v160_v31, %v175_v29 }
  0xe1   :  { %v2116_v37 = vrot.slane %v184_v36, %v190_v32  ;;  %v199_v38 = vcombine.low %v167_v34, %v182_v33  ;;  %v200_v39 = vcombine.high %v167_v34, %v182_v33  ;;  %v2118_v40 = vrot.slane %v183_v35, %v190_v32 }
  0xe3   :  { %v2120_v41 = vrot.slane %v199_v38, %v190_v32  ;;  %v2122_v42 = vrot.slane %v200_v39, %v190_v32  ;;  %v215_v36 = vcombine.high %v2118_v40, %v1989_v13 }
  0xe5   :  { %v298_v43 = vpop.f32.mrb[0].mxu1 }
  0xe6   :  { %v305_v44 = vadd.f32 %v298_v43, %v2118_v40  ;;  %v300_v45 = vpop.f32.mrb[1].mxu1 }
  0xe7   :  { %v302_v46 = vpop.f32.mrb[2].mxu1 }
  0xe8   :  { %1851 = vtanh.f32 %v305_v44  ;;  %v303_v47 = vpop.f32.mrb[3].mxu1  ;;  %v1661_v49 = vmul.f32 -1.442695, %v305_v44 }
  0xea   :  { %1853 = vpow2.f32 %v1661_v49 }
  0xf2   :  { %v1852_v48 = vpop.eup %1851 }
  0xf3   :  { %315 = vrot.lane.b32.xlu0 %v1852_v48, %s1992_s2 }
  0xf4   :  { %v1854_v50 = vpop.eup %1853 }
  0xf5   :  { %v309_v51 = vadd.f32 1.0, %v1854_v50 }
  0xf7   :  { %1855 = vrcp.f32 %v309_v51 }
 0x101   :  { %v1856_v52 = vpop.eup %1855 }
 0x102   :  { %v313_v55 = vmul.f32 0.0, %v1856_v52 }
 0x165   :  { %v316_v53 = vpop.permute.xlu0 %315 }
 0x166   :  { %v318_v54 = vmul.f32 %v1856_v52, %v316_v53 }
 0x168   :  { %320 = vrot.lane.b32.xlu0 %v318_v54, %s1993_s15 }
 0x1da   :  { %v321_v56 = vpop.permute.xlu0 %320 }
 0x1db   :  { %v2127_v57 = vadd.f32 %v321_v56, %v313_v55 }
 0x1dd   :  { %1857 = vtanh.f32 %v2127_v57 }
 0x1e7   :  { %v1858_v60 = vpop.eup %1857 }
 0x1e8   :  { %326 = vrot.lane.b32.xlu1 %v1858_v60, %s1992_s2 }
 0x25a   :  { %v327_v61 = vpop.permute.xlu1 %326 }
 0x25b   :  { %v329_v62 = vmul.f32 %v1856_v52, %v327_v61 }
 0x25d   :  { %v330_v63 = vpack.c.bf16 %v329_v62, %v329_v62 }
 0x25f   :  { %332 = vrot.lane.b32.xlu1 %v330_v63, %s1993_s15 }
 0x2d1   :  { %v333_v3 = vpop.permute.xlu1 %332 }
 0x2d2   :  { %1743 = vmatmul.mubr.msk.bf16.vlgmr.msra.gmra.mrb[4].mxu0 %vm346_vm3, %v333_v3 }
 0x2d3   :  { %429 = vmatpush1.bf16.msra.mxu0 %v2059_v2  ;;  %460 = vmatprep.mubr.bf16.mxu0 %v1987_v1 }
 0x2d4   :  { %430 = vmatprep.subr.bf16.mxu0 %v2068_v4 }
 0x2d7   :  { %431 = vmatpush1.bf16.msra.mxu0 %v2080_v7 }
 0x2d8   :  { %432 = vmatprep.subr.bf16.mxu0 %v2086_v8 }
 0x2db   :  { %433 = vmatpush1.bf16.msra.mxu0 %v2092_v9 }
 0x2dc   :  { %434 = vmatprep.subr.bf16.mxu0 %v2098_v10 }
 0x2df   :  { %435 = vmatpush1.bf16.msra.mxu0 %v2104_v11 }
 0x2e0   :  { %1754 = vmatprep.subr.bf16.mxu0 %v1989_v13 }
 0x3a5   :  { %v384_v6 = vpop.f32.mrb[4].mxu0 }
 0x3a6   :  { %v385_v14 = vadd.f32 %v384_v6, %v300_v45  ;;  %v1744_v15 = vpop.f32.mrb[5].mxu0 }
 0x3a7   :  { %v387_v16 = vpop.f32.mrb[6].mxu0 }
 0x3a8   :  { %v390_v17 = vadd.f32 %v2167_v5, %v385_v14  ;;  %v1745_v18 = vpop.f32.mrb[7].mxu0 }
 0x3aa   :  { %1859 = vtanh.f32 %v390_v17  ;;  %v1665_v20 = vmul.f32 -1.442695, %v390_v17 }
 0x3ac   :  { %1861 = vpow2.f32 %v1665_v20 }
 0x3b4   :  { %v1860_v19 = vpop.eup %1859 }
 0x3b5   :  { %400 = vrot.lane.b32.xlu0 %v1860_v19, %s1992_s2 }
 0x3b6   :  { %v1862_v21 = vpop.eup %1861 }
 0x3b7   :  { %v394_v22 = vadd.f32 1.0, %v1862_v21 }
 0x3b9   :  { %1863 = vrcp.f32 %v394_v22 }
 0x3c3   :  { %v1864_v23 = vpop.eup %1863 }
 0x3c4   :  { %v398_v26 = vmul.f32 0.0, %v1864_v23 }
 0x427   :  { %v401_v24 = vpop.permute.xlu0 %400 }
 0x428   :  { %v403_v25 = vmul.f32 %v1864_v23, %v401_v24 }
 0x42a   :  { %405 = vrot.lane.b32.xlu1 %v403_v25, %s1993_s15 }
 0x42e   :  { %416 = vrot.lane.b32.xlu1 %v329_v62, %s1993_s15 }
 0x49c   :  { %v406_v27 = vpop.permute.xlu1 %405 }
 0x49d   :  { %v2173_v28 = vadd.f32 %v406_v27, %v398_v26 }
 0x49f   :  { %1865 = vtanh.f32 %v2173_v28 }
 0x4a0   :  { %v417_v32 = vpop.permute.xlu1 %416 }
 0x4a9   :  { %v1866_v29 = vpop.eup %1865 }
 0x4aa   :  { %411 = vrot.lane.b32.xlu0 %v1866_v29, %s1992_s2 }
 0x51c   :  { %v412_v30 = vpop.permute.xlu0 %411 }
 0x51d   :  { %v414_v31 = vmul.f32 %v1864_v23, %v412_v30 }
 0x51f   :  { %420 = vrot.lane.b32.xlu0 %v414_v31, %s1992_s2 }
 0x591   :  { %v421_v33 = vpop.permute.xlu0 %420 }
 0x592   :  { %v423_v34 = vsel %vm346_vm3, %v417_v32, %v421_v33 }
 0x593   :  { %v424_v35 = vpack.c.bf16 %v423_v34, %v423_v34 }
 0x595   :  { %1666 = vmatmul.mubr.msk.bf16.vlgmr.msra.gmra.mrb[8].mxu0 %vm260_vm4, %v424_v35 }
 0x596   :  { %1755 = vmatpush3.bf16.msra.mxu0 %v2133_v58  ;;  %1758 = vmatprep.mubr.msk.bf16.mxu0 %vm1994_vm2, %v1989_v13 }
 0x597   :  { %1756 = vmatprep.subr.bf16.mxu0 %v1989_v13 }
 0x59a   :  { %1757 = vmatpush3.bf16.msra.mxu0 %v2143_v59 }
 0x59b   :  { %730 = vmatprep.subr.bf16.mxu0 %v2053_v0 }
 0x668   :  { %v462_v38 = vpop.f32.mrb[8].mxu0 }
 0x669   :  { %v469_v39 = vadd.f32 %v462_v38, %v215_v36  ;;  %v464_v43 = vpop.f32.mrb[9].mxu0 }
 0x66a   :  { %v466_v44 = vpop.f32.mrb[10].mxu0 }
 0x66b   :  { %1867 = vtanh.f32 %v469_v39  ;;  %v467_v45 = vpop.f32.mrb[11].mxu0  ;;  %v1667_v47 = vmul.f32 -1.442695, %v469_v39 }
 0x66d   :  { %1869 = vpow2.f32 %v1667_v47 }
 0x675   :  { %v1868_v46 = vpop.eup %1867 }
 0x676   :  { %479 = vrot.lane.b32.xlu1 %v1868_v46, %s1992_s2 }
 0x677   :  { %v1870_v48 = vpop.eup %1869 }
 0x678   :  { %v473_v49 = vadd.f32 1.0, %v1870_v48 }
 0x67a   :  { %1871 = vrcp.f32 %v473_v49 }
 0x684   :  { %v1872_v50 = vpop.eup %1871 }
 0x685   :  { %v477_v40 = vmul.f32 %v1872_v50, %v2127_v57 }
 0x6e8   :  { %v480_v51 = vpop.permute.xlu1 %479 }
 0x6e9   :  { %v482_v52 = vmul.f32 %v1872_v50, %v480_v51 }
 0x6eb   :  { %484 = vrot.lane.b32.xlu0 %v482_v52, %s1993_s15 }
 0x75d   :  { %v485_v53 = vpop.permute.xlu0 %484 }
 0x75e   :  { %v2191_v54 = vadd.f32 %v485_v53, %v477_v40 }
 0x760   :  { %1873 = vtanh.f32 %v2191_v54 }
 0x76a   :  { %v1874_v55 = vpop.eup %1873 }
 0x76b   :  { %490 = vrot.lane.b32.xlu1 %v1874_v55, %s1992_s2 }
 0x7dd   :  { %v491_v56 = vpop.permute.xlu1 %490 }
 0x7de   :  { %v493_v60 = vmul.f32 %v1872_v50, %v491_v56 }
 0x7e0   :  { %v494_v61 = vpack.c.bf16 %v493_v60, %v493_v60 }
 0x7e2   :  { %496 = vrot.lane.b32.xlu0 %v494_v61, %s1993_s15 }
 0x854   :  { %v497_v62 = vpop.permute.xlu0 %496 }
 0x855   :  { %1751 = vmatmul.mubr.msk.bf16.vlgmr.msra.gmra.mrb[4].mxu1 %vm346_vm3, %v497_v62 }
 0x856   :  { %580 = vmatpush1.bf16.msra.mxu1 %v2059_v2  ;;  %611 = vmatprep.mubr.bf16.mxu1 %v1987_v1 }
 0x857   :  { %581 = vmatprep.subr.bf16.mxu1 %v2068_v4 }
 0x85a   :  { %582 = vmatpush1.bf16.msra.mxu1 %v2080_v7 }
 0x85b   :  { %583 = vmatprep.subr.bf16.mxu1 %v2086_v8 }
 0x85e   :  { %584 = vmatpush1.bf16.msra.mxu1 %v2092_v9 }
 0x85f   :  { %585 = vmatprep.subr.bf16.mxu1 %v2098_v10 }
 0x862   :  { %586 = vmatpush1.bf16.msra.mxu1 %v2104_v11 }
 0x863   :  { %1762 = vmatprep.subr.bf16.mxu1 %v1989_v13 }
 0x928   :  { %v535_v57 = vpop.f32.mrb[4].mxu1 }
 0x929   :  { %v536_v63 = vadd.f32 %v535_v57, %v464_v43  ;;  %v1752_v3 = vpop.f32.mrb[5].mxu1 }
 0x92a   :  { %v538_v6 = vpop.f32.mrb[6].mxu1 }
 0x92b   :  { %v541_v14 = vadd.f32 %v2167_v5, %v536_v63  ;;  %v1753_v15 = vpop.f32.mrb[7].mxu1 }
 0x92d   :  { %1875 = vtanh.f32 %v541_v14  ;;  %v1669_v17 = vmul.f32 -1.442695, %v541_v14 }
 0x92f   :  { %1877 = vpow2.f32 %v1669_v17 }
 0x937   :  { %v1876_v16 = vpop.eup %1875 }
 0x938   :  { %551 = vrot.lane.b32.xlu1 %v1876_v16, %s1992_s2 }
 0x939   :  { %v1878_v18 = vpop.eup %1877 }
 0x93a   :  { %v545_v19 = vadd.f32 1.0, %v1878_v18 }
 0x93c   :  { %1879 = vrcp.f32 %v545_v19 }
 0x946   :  { %v1880_v20 = vpop.eup %1879 }
 0x947   :  { %v549_v23 = vmul.f32 %v1880_v20, %v2173_v28 }
 0x9aa   :  { %v552_v21 = vpop.permute.xlu1 %551 }
 0x9ab   :  { %v554_v22 = vmul.f32 %v1880_v20, %v552_v21 }
 0x9ad   :  { %556 = vrot.lane.b32.xlu0 %v554_v22, %s1993_s15 }
 0x9b1   :  { %567 = vrot.lane.b32.xlu0 %v493_v60, %s1993_s15 }
 0xa1f   :  { %v557_v24 = vpop.permute.xlu0 %556 }
 0xa20   :  { %v2211_v25 = vadd.f32 %v557_v24, %v549_v23 }
 0xa22   :  { %1881 = vtanh.f32 %v2211_v25 }
 0xa23   :  { %v568_v30 = vpop.permute.xlu0 %567 }
 0xa2c   :  { %v1882_v26 = vpop.eup %1881 }
 0xa2d   :  { %562 = vrot.lane.b32.xlu1 %v1882_v26, %s1992_s2 }
 0xa9f   :  { %v563_v27 = vpop.permute.xlu1 %562 }
 0xaa0   :  { %v565_v29 = vmul.f32 %v1880_v20, %v563_v27 }
 0xaa2   :  { %571 = vrot.lane.b32.xlu1 %v565_v29, %s1992_s2 }
 0xb14   :  { %v572_v31 = vpop.permute.xlu1 %571 }
 0xb15   :  { %v574_v32 = vsel %vm346_vm3, %v568_v30, %v572_v31 }
 0xb16   :  { %v575_v33 = vpack.c.bf16 %v574_v32, %v574_v32 }
 0xb18   :  { %1670 = vmatmul.mubr.msk.bf16.vlgmr.msra.gmra.mrb[8].mxu1 %vm260_vm4, %v575_v33 }
 0xb19   :  { %1763 = vmatpush3.bf16.msra.mxu1 %v2133_v58  ;;  %1766 = vmatprep.mubr.msk.bf16.mxu1 %vm1994_vm2, %v1989_v13 }
 0xb1a   :  { %1764 = vmatprep.subr.bf16.mxu1 %v1989_v13 }
 0xb1d   :  { %1765 = vmatpush3.bf16.msra.mxu1 %v2143_v59 }
 0xb1e   :  { %881 = vmatprep.subr.bf16.mxu1 %v2053_v0 }
 0xbeb   :  { %v613_v28 = vpop.f32.mrb[8].mxu1 }
 0xbec   :  { %v620_v34 = vadd.f32 %v613_v28, %v2116_v37  ;;  %v615_v35 = vpop.f32.mrb[9].mxu1 }
 0xbed   :  { %v617_v36 = vpop.f32.mrb[10].mxu1 }
 0xbee   :  { %1883 = vtanh.f32 %v620_v34  ;;  %v618_v38 = vpop.f32.mrb[11].mxu1  ;;  %v1671_v43 = vmul.f32 -1.442695, %v620_v34 }
 0xbf0   :  { %1885 = vpow2.f32 %v1671_v43 }
 0xbf8   :  { %v1884_v39 = vpop.eup %1883 }
 0xbf9   :  { %630 = vrot.lane.b32.xlu0 %v1884_v39, %s1992_s2 }
 0xbfa   :  { %v1886_v44 = vpop.eup %1885 }
 0xbfb   :  { %v624_v45 = vadd.f32 1.0, %v1886_v44 }
 0xbfd   :  { %1887 = vrcp.f32 %v624_v45 }
 0xc07   :  { %v1888_v46 = vpop.eup %1887 }
 0xc08   :  { %v628_v49 = vmul.f32 %v1888_v46, %v2191_v54 }
 0xc6b   :  { %v631_v47 = vpop.permute.xlu0 %630 }
 0xc6c   :  { %v633_v48 = vmul.f32 %v1888_v46, %v631_v47 }
 0xc6e   :  { %635 = vrot.lane.b32.xlu1 %v633_v48, %s1993_s15 }
 0xce0   :  { %v636_v50 = vpop.permute.xlu1 %635 }
 0xce1   :  { %v2228_v51 = vadd.f32 %v636_v50, %v628_v49 }
 0xce3   :  { %1889 = vtanh.f32 %v2228_v51 }
 0xced   :  { %v1890_v52 = vpop.eup %1889 }
 0xcee   :  { %641 = vrot.lane.b32.xlu0 %v1890_v52, %s1992_s2 }
 0xd60   :  { %v642_v40 = vpop.permute.xlu0 %641 }
 0xd61   :  { %v644_v53 = vmul.f32 %v1888_v46, %v642_v40 }
 0xd63   :  { %v645_v55 = vpack.c.bf16 %v644_v53, %v644_v53 }
 0xd65   :  { %647 = vrot.lane.b32.xlu1 %v645_v55, %s1993_s15 }
 0xdd7   :  { %v648_v56 = vpop.permute.xlu1 %647 }
 0xdd8   :  { %1759 = vmatmul.mubr.msk.bf16.vlgmr.msra.gmra.mrb[12].mxu0 %vm346_vm3, %v648_v56 }
 0xdd9   :  { %731 = vmatpush1.bf16.msra.mxu0 %v2059_v2  ;;  %762 = vmatprep.mubr.bf16.mxu0 %v1987_v1 }
 0xdda   :  { %732 = vmatprep.subr.bf16.mxu0 %v2068_v4 }
 0xddd   :  { %733 = vmatpush1.bf16.msra.mxu0 %v2080_v7 }
 0xdde   :  { %734 = vmatprep.subr.bf16.mxu0 %v2086_v8 }
 0xde1   :  { %735 = vmatpush1.bf16.msra.mxu0 %v2092_v9 }
 0xde2   :  { %736 = vmatprep.subr.bf16.mxu0 %v2098_v10 }
 0xde5   :  { %737 = vmatpush1.bf16.msra.mxu0 %v2104_v11 }
 0xde6   :  { %1770 = vmatprep.subr.bf16.mxu0 %v1989_v13 }
 0xeab   :  { %v686_v54 = vpop.f32.mrb[12].mxu0 }
 0xeac   :  { %v687_v60 = vadd.f32 %v686_v54, %v615_v35  ;;  %v1760_v61 = vpop.f32.mrb[13].mxu0 }
 0xead   :  { %v689_v62 = vpop.f32.mrb[14].mxu0 }
 0xeae   :  { %v692_v57 = vadd.f32 %v2167_v5, %v687_v60  ;;  %v1761_v63 = vpop.f32.mrb[15].mxu0 }
 0xeb0   :  { %1891 = vtanh.f32 %v692_v57  ;;  %v1673_v6 = vmul.f32 -1.442695, %v692_v57 }
 0xeb2   :  { %1893 = vpow2.f32 %v1673_v6 }
 0xeba   :  { %v1892_v3 = vpop.eup %1891 }
 0xebb   :  { %702 = vrot.lane.b32.xlu0 %v1892_v3, %s1992_s2 }
 0xebc   :  { %v1894_v14 = vpop.eup %1893 }
 0xebd   :  { %v696_v15 = vadd.f32 1.0, %v1894_v14 }
 0xebf   :  { %1895 = vrcp.f32 %v696_v15 }
 0xec9   :  { %v1896_v16 = vpop.eup %1895 }
 0xeca   :  { %v700_v19 = vmul.f32 %v1896_v16, %v2211_v25  ;;  %v216_v25 = vcombine.high %v2116_v37, %v1989_v13 }
 0xf2d   :  { %v703_v17 = vpop.permute.xlu0 %702 }
 0xf2e   :  { %v705_v18 = vmul.f32 %v1896_v16, %v703_v17 }
 0xf30   :  { %707 = vrot.lane.b32.xlu1 %v705_v18, %s1993_s15 }
 0xf34   :  { %718 = vrot.lane.b32.xlu1 %v644_v53, %s1993_s15 }
 0xfa2   :  { %v708_v20 = vpop.permute.xlu1 %707 }
 0xfa3   :  { %v2248_v21 = vadd.f32 %v708_v20, %v700_v19 }
 0xfa5   :  { %1897 = vtanh.f32 %v2248_v21 }
 0xfa6   :  { %v719_v26 = vpop.permute.xlu1 %718 }
 0xfaf   :  { %v1898_v22 = vpop.eup %1897 }
 0xfb0   :  { %713 = vrot.lane.b32.xlu0 %v1898_v22, %s1992_s2 }
0x1022   :  { %v714_v23 = vpop.permute.xlu0 %713 }
0x1023   :  { %v716_v24 = vmul.f32 %v1896_v16, %v714_v23 }
0x1025   :  { %722 = vrot.lane.b32.xlu0 %v716_v24, %s1992_s2 }
0x1097   :  { %v723_v27 = vpop.permute.xlu0 %722 }
0x1098   :  { %v725_v29 = vsel %vm346_vm3, %v719_v26, %v723_v27 }
0x1099   :  { %v726_v30 = vpack.c.bf16 %v725_v29, %v725_v29 }
0x109b   :  { %1674 = vmatmul.mubr.msk.bf16.vlgmr.msra.gmra.mrb[16].mxu0 %vm260_vm4, %v726_v30 }
0x109c   :  { %1771 = vmatpush3.bf16.msra.mxu0 %v2133_v58  ;;  %1774 = vmatprep.mubr.msk.bf16.mxu0 %vm1994_vm2, %v1989_v13 }
0x109d   :  { %1772 = vmatprep.subr.bf16.mxu0 %v1989_v13 }
0x10a0   :  { %1773 = vmatpush3.bf16.msra.mxu0 %v2143_v59 }
0x10a1   :  { %1032 = vmatprep.subr.bf16.mxu0 %v2053_v0 }
0x116e   :  { %v764_v31 = vpop.f32.mrb[16].mxu0 }
0x116f   :  { %v771_v32 = vadd.f32 %v764_v31, %v216_v25  ;;  %v766_v33 = vpop.f32.mrb[17].mxu0 }
0x1170   :  { %v768_v28 = vpop.f32.mrb[18].mxu0 }
0x1171   :  { %1899 = vtanh.f32 %v771_v32  ;;  %v769_v34 = vpop.f32.mrb[19].mxu0  ;;  %v1675_v36 = vmul.f32 -1.442695, %v771_v32 }
0x1173   :  { %1901 = vpow2.f32 %v1675_v36 }
0x117b   :  { %v1900_v35 = vpop.eup %1899 }
0x117c   :  { %781 = vrot.lane.b32.xlu1 %v1900_v35, %s1992_s2 }
0x117d   :  { %v1902_v38 = vpop.eup %1901 }
0x117e   :  { %v775_v39 = vadd.f32 1.0, %v1902_v38 }
0x1180   :  { %1903 = vrcp.f32 %v775_v39 }
0x118a   :  { %v1904_v43 = vpop.eup %1903 }
0x118b   :  { %v779_v37 = vmul.f32 %v1904_v43, %v2228_v51 }
0x11ee   :  { %v782_v44 = vpop.permute.xlu1 %781 }
0x11ef   :  { %v784_v45 = vmul.f32 %v1904_v43, %v782_v44 }
0x11f1   :  { %786 = vrot.lane.b32.xlu0 %v784_v45, %s1993_s15 }
0x1263   :  { %v787_v46 = vpop.permute.xlu0 %786 }
0x1264   :  { %v2266_v47 = vadd.f32 %v787_v46, %v779_v37 }
0x1266   :  { %1905 = vtanh.f32 %v2266_v47 }
0x1270   :  { %v1906_v48 = vpop.eup %1905 }
0x1271   :  { %792 = vrot.lane.b32.xlu1 %v1906_v48, %s1992_s2 }
0x12e3   :  { %v793_v49 = vpop.permute.xlu1 %792 }
0x12e4   :  { %v795_v50 = vmul.f32 %v1904_v43, %v793_v49 }
0x12e6   :  { %v796_v52 = vpack.c.bf16 %v795_v50, %v795_v50 }
0x12e8   :  { %798 = vrot.lane.b32.xlu0 %v796_v52, %s1993_s15 }
0x135a   :  { %v799_v40 = vpop.permute.xlu0 %798 }
0x135b   :  { %1767 = vmatmul.mubr.msk.bf16.vlgmr.msra.gmra.mrb[12].mxu1 %vm346_vm3, %v799_v40 }
0x135c   :  { %882 = vmatpush1.bf16.msra.mxu1 %v2059_v2  ;;  %913 = vmatprep.mubr.bf16.mxu1 %v1987_v1 }
0x135d   :  { %883 = vmatprep.subr.bf16.mxu1 %v2068_v4 }
0x1360   :  { %884 = vmatpush1.bf16.msra.mxu1 %v2080_v7 }
0x1361   :  { %885 = vmatprep.subr.bf16.mxu1 %v2086_v8 }
0x1364   :  { %886 = vmatpush1.bf16.msra.mxu1 %v2092_v9 }
0x1365   :  { %887 = vmatprep.subr.bf16.mxu1 %v2098_v10 }
0x1368   :  { %888 = vmatpush1.bf16.msra.mxu1 %v2104_v11 }
0x1369   :  { %1778 = vmatprep.subr.bf16.mxu1 %v1989_v13 }
0x142e   :  { %v837_v51 = vpop.f32.mrb[12].mxu1 }
0x142f   :  { %v838_v53 = vadd.f32 %v837_v51, %v766_v33  ;;  %v1768_v55 = vpop.f32.mrb[13].mxu1 }
0x1430   :  { %v840_v56 = vpop.f32.mrb[14].mxu1 }
0x1431   :  { %v843_v54 = vadd.f32 %v2167_v5, %v838_v53  ;;  %v1769_v60 = vpop.f32.mrb[15].mxu1 }
0x1433   :  { %1907 = vtanh.f32 %v843_v54  ;;  %v1677_v62 = vmul.f32 -1.442695, %v843_v54 }
0x1435   :  { %1909 = vpow2.f32 %v1677_v62 }
0x143d   :  { %v1908_v61 = vpop.eup %1907 }
0x143e   :  { %853 = vrot.lane.b32.xlu1 %v1908_v61, %s1992_s2 }
0x143f   :  { %v1910_v57 = vpop.eup %1909 }
0x1440   :  { %v847_v63 = vadd.f32 1.0, %v1910_v57 }
0x1442   :  { %1911 = vrcp.f32 %v847_v63 }
0x144c   :  { %v1912_v3 = vpop.eup %1911 }
0x144d   :  { %v851_v15 = vmul.f32 %v1912_v3, %v2248_v21 }
0x14b0   :  { %v854_v6 = vpop.permute.xlu1 %853 }
0x14b1   :  { %v856_v14 = vmul.f32 %v1912_v3, %v854_v6 }
0x14b3   :  { %858 = vrot.lane.b32.xlu0 %v856_v14, %s1993_s15 }
0x14b7   :  { %869 = vrot.lane.b32.xlu0 %v795_v50, %s1993_s15 }
0x1525   :  { %v859_v16 = vpop.permute.xlu0 %858 }
0x1526   :  { %v2286_v17 = vadd.f32 %v859_v16, %v851_v15 }
0x1528   :  { %1913 = vtanh.f32 %v2286_v17 }
0x1529   :  { %v870_v22 = vpop.permute.xlu0 %869 }
0x1532   :  { %v1914_v18 = vpop.eup %1913 }
0x1533   :  { %864 = vrot.lane.b32.xlu1 %v1914_v18, %s1992_s2 }
0x15a5   :  { %v865_v19 = vpop.permute.xlu1 %864 }
0x15a6   :  { %v867_v20 = vmul.f32 %v1912_v3, %v865_v19 }
0x15a8   :  { %873 = vrot.lane.b32.xlu1 %v867_v20, %s1992_s2 }
0x161a   :  { %v874_v23 = vpop.permute.xlu1 %873 }
0x161b   :  { %v876_v24 = vsel %vm346_vm3, %v870_v22, %v874_v23 }
0x161c   :  { %v877_v26 = vpack.c.bf16 %v876_v24, %v876_v24 }
0x161e   :  { %1678 = vmatmul.mubr.msk.bf16.vlgmr.msra.gmra.mrb[16].mxu1 %vm260_vm4, %v877_v26 }
0x161f   :  { %1779 = vmatpush3.bf16.msra.mxu1 %v2133_v58  ;;  %1782 = vmatprep.mubr.msk.bf16.mxu1 %vm1994_vm2, %v1989_v13 }
0x1620   :  { %1780 = vmatprep.subr.bf16.mxu1 %v1989_v13 }
0x1623   :  { %1781 = vmatpush3.bf16.msra.mxu1 %v2143_v59 }
0x1624   :  { %1183 = vmatprep.subr.bf16.mxu1 %v2053_v0 }
0x16f1   :  { %v915_v21 = vpop.f32.mrb[16].mxu1 }
0x16f2   :  { %v922_v27 = vadd.f32 %v915_v21, %v2120_v41  ;;  %v917_v29 = vpop.f32.mrb[17].mxu1 }
0x16f3   :  { %v919_v30 = vpop.f32.mrb[18].mxu1 }
0x16f4   :  { %1915 = vtanh.f32 %v922_v27  ;;  %v920_v25 = vpop.f32.mrb[19].mxu1  ;;  %v1679_v32 = vmul.f32 -1.442695, %v922_v27 }
0x16f6   :  { %1917 = vpow2.f32 %v1679_v32 }
0x16fe   :  { %v1916_v31 = vpop.eup %1915 }
0x16ff   :  { %932 = vrot.lane.b32.xlu0 %v1916_v31, %s1992_s2 }
0x1700   :  { %v1918_v33 = vpop.eup %1917 }
0x1701   :  { %v926_v28 = vadd.f32 1.0, %v1918_v33 }
0x1703   :  { %1919 = vrcp.f32 %v926_v28 }
0x170d   :  { %v1920_v34 = vpop.eup %1919 }
0x170e   :  { %v930_v38 = vmul.f32 %v1920_v34, %v2266_v47 }
0x1771   :  { %v933_v35 = vpop.permute.xlu0 %932 }
0x1772   :  { %v935_v36 = vmul.f32 %v1920_v34, %v933_v35 }
0x1774   :  { %937 = vrot.lane.b32.xlu1 %v935_v36, %s1993_s15 }
0x17e6   :  { %v938_v39 = vpop.permute.xlu1 %937 }
0x17e7   :  { %v2303_v43 = vadd.f32 %v938_v39, %v930_v38 }
0x17e9   :  { %1921 = vtanh.f32 %v2303_v43 }
0x17f3   :  { %v1922_v44 = vpop.eup %1921 }
0x17f4   :  { %943 = vrot.lane.b32.xlu0 %v1922_v44, %s1992_s2 }
0x1866   :  { %v944_v45 = vpop.permute.xlu0 %943 }
0x1867   :  { %v946_v37 = vmul.f32 %v1920_v34, %v944_v45 }
0x1869   :  { %v947_v46 = vpack.c.bf16 %v946_v37, %v946_v37 }
0x186b   :  { %949 = vrot.lane.b32.xlu1 %v947_v46, %s1993_s15 }
0x18dd   :  { %v950_v48 = vpop.permute.xlu1 %949 }
0x18de   :  { %1775 = vmatmul.mubr.msk.bf16.vlgmr.msra.gmra.mrb[20].mxu0 %vm346_vm3, %v950_v48 }
0x18df   :  { %1033 = vmatpush1.bf16.msra.mxu0 %v2059_v2  ;;  %1064 = vmatprep.mubr.bf16.mxu0 %v1987_v1 }
0x18e0   :  { %1034 = vmatprep.subr.bf16.mxu0 %v2068_v4 }
0x18e3   :  { %1035 = vmatpush1.bf16.msra.mxu0 %v2080_v7 }
0x18e4   :  { %1036 = vmatprep.subr.bf16.mxu0 %v2086_v8 }
0x18e7   :  { %1037 = vmatpush1.bf16.msra.mxu0 %v2092_v9 }
0x18e8   :  { %1038 = vmatprep.subr.bf16.mxu0 %v2098_v10 }
0x18eb   :  { %1039 = vmatpush1.bf16.msra.mxu0 %v2104_v11 }
0x18ec   :  { %1786 = vmatprep.subr.bf16.mxu0 %v1989_v13 }
0x19b1   :  { %v988_v47 = vpop.f32.mrb[20].mxu0 }
0x19b2   :  { %v989_v49 = vadd.f32 %v988_v47, %v917_v29  ;;  %v1776_v50 = vpop.f32.mrb[21].mxu0 }
0x19b3   :  { %v991_v52 = vpop.f32.mrb[22].mxu0 }
0x19b4   :  { %v994_v40 = vadd.f32 %v2167_v5, %v989_v49  ;;  %v1777_v51 = vpop.f32.mrb[23].mxu0 }
0x19b6   :  { %1923 = vtanh.f32 %v994_v40  ;;  %v1681_v55 = vmul.f32 -1.442695, %v994_v40 }
0x19b8   :  { %1925 = vpow2.f32 %v1681_v55 }
0x19c0   :  { %v1924_v53 = vpop.eup %1923 }
0x19c1   :  { %1004 = vrot.lane.b32.xlu0 %v1924_v53, %s1992_s2 }
0x19c2   :  { %v1926_v56 = vpop.eup %1925 }
0x19c3   :  { %v998_v54 = vadd.f32 1.0, %v1926_v56 }
0x19c5   :  { %1927 = vrcp.f32 %v998_v54 }
0x19cf   :  { %v1928_v60 = vpop.eup %1927 }
0x19d0   :  { %v1002_v57 = vmul.f32 %v1928_v60, %v2286_v17  ;;  %v217_v17 = vcombine.high %v2120_v41, %v1989_v13 }
0x1a33   :  { %v1005_v61 = vpop.permute.xlu0 %1004 }
0x1a34   :  { %v1007_v62 = vmul.f32 %v1928_v60, %v1005_v61 }
0x1a36   :  { %1009 = vrot.lane.b32.xlu1 %v1007_v62, %s1993_s15 }
0x1a3a   :  { %1020 = vrot.lane.b32.xlu1 %v946_v37, %s1993_s15 }
0x1aa8   :  { %v1010_v63 = vpop.permute.xlu1 %1009 }
0x1aa9   :  { %v2323_v3 = vadd.f32 %v1010_v63, %v1002_v57 }
0x1aab   :  { %1929 = vtanh.f32 %v2323_v3 }
0x1aac   :  { %v1021_v16 = vpop.permute.xlu1 %1020 }
0x1ab5   :  { %v1930_v6 = vpop.eup %1929 }
0x1ab6   :  { %1015 = vrot.lane.b32.xlu0 %v1930_v6, %s1992_s2 }
0x1b28   :  { %v1016_v14 = vpop.permute.xlu0 %1015 }
0x1b29   :  { %v1018_v15 = vmul.f32 %v1928_v60, %v1016_v14 }
0x1b2b   :  { %1024 = vrot.lane.b32.xlu0 %v1018_v15, %s1992_s2 }
0x1b9d   :  { %v1025_v18 = vpop.permute.xlu0 %1024 }
0x1b9e   :  { %v1027_v19 = vsel %vm346_vm3, %v1021_v16, %v1025_v18 }
0x1b9f   :  { %v1028_v20 = vpack.c.bf16 %v1027_v19, %v1027_v19 }
0x1ba1   :  { %1682 = vmatmul.mubr.msk.bf16.vlgmr.msra.gmra.mrb[24].mxu0 %vm260_vm4, %v1028_v20 }
0x1ba2   :  { %1787 = vmatpush3.bf16.msra.mxu0 %v2133_v58  ;;  %1790 = vmatprep.mubr.msk.bf16.mxu0 %vm1994_vm2, %v1989_v13 }
0x1ba3   :  { %1788 = vmatprep.subr.bf16.mxu0 %v1989_v13 }
0x1ba6   :  { %1789 = vmatpush3.bf16.msra.mxu0 %v2143_v59 }
0x1ba7   :  { %1334 = vmatprep.subr.bf16.mxu0 %v2053_v0 }
0x1c74   :  { %v1066_v22 = vpop.f32.mrb[24].mxu0 }
0x1c75   :  { %v1073_v23 = vadd.f32 %v1066_v22, %v217_v17  ;;  %v1068_v24 = vpop.f32.mrb[25].mxu0 }
0x1c76   :  { %v1070_v26 = vpop.f32.mrb[26].mxu0 }
0x1c77   :  { %1931 = vtanh.f32 %v1073_v23  ;;  %v1071_v21 = vpop.f32.mrb[27].mxu0  ;;  %v1683_v29 = vmul.f32 -1.442695, %v1073_v23 }
0x1c78   :  { %v1979_v21 = vld [vmem:[%s2468_s3] ss:$8 sps:$4 sm:$0xff]  }
0x1c79   :  { %1933 = vpow2.f32 %v1683_v29  ;;  %v1981_v29 = vld [vmem:[%s2468_s3 + $0x10] ss:$8 sps:$4 sm:$0xff]  }
0x1c81   :  { %v1932_v27 = vpop.eup %1931 }
0x1c82   :  { %1083 = vrot.lane.b32.xlu1 %v1932_v27, %s1992_s2  ;;  %v1980_v27 = vld [vmem:[%s2468_s3 + $0x14] ss:$8 sps:$4 sm:$0xff]  }
0x1c83   :  { %v1934_v30 = vpop.eup %1933 }
0x1c84   :  { %v1077_v25 = vadd.f32 1.0, %v1934_v30  ;;  %v1982_v30 = vld [vmem:[%s2468_s3 + $0x24] ss:$8 sps:$4 sm:$0xff]  }
0x1c86   :  { %1935 = vrcp.f32 %v1077_v25  ;;  %v1983_v25 = vld [vmem:[%s2468_s3 + $0x20] ss:$8 sps:$4 sm:$0xff]  }
0x1c90   :  { %v1936_v31 = vpop.eup %1935 }
0x1c91   :  { %v1081_v41 = vmul.f32 %v1936_v31, %v2303_v43 }
0x1cf4   :  { %v1084_v32 = vpop.permute.xlu1 %1083 }
0x1cf5   :  { %v1086_v0 = vmul.f32 %v1936_v31, %v1084_v32 }
0x1cf7   :  { %1088 = vrot.lane.b32.xlu0 %v1086_v0, %s1993_s15 }
0x1d69   :  { %v1089_v33 = vpop.permute.xlu0 %1088 }
0x1d6a   :  { %v2341_v28 = vadd.f32 %v1089_v33, %v1081_v41 }
0x1d6c   :  { %1937 = vtanh.f32 %v2341_v28 }
0x1d76   :  { %v1938_v34 = vpop.eup %1937 }
0x1d77   :  { %1094 = vrot.lane.b32.xlu1 %v1938_v34, %s1992_s2 }
0x1de9   :  { %v1095_v35 = vpop.permute.xlu1 %1094 }
0x1dea   :  { %v1097_v36 = vmul.f32 %v1936_v31, %v1095_v35  ;;  %v1985_v31 = vld [vmem:[%s2468_s3 + $0x30] ss:$8 sps:$4 sm:$0xff]  }
0x1dec   :  { %v1098_v38 = vpack.c.bf16 %v1097_v36, %v1097_v36 }
0x1dee   :  { %1100 = vrot.lane.b32.xlu0 %v1098_v38, %s1993_s15 }
0x1e60   :  { %v1101_v39 = vpop.permute.xlu0 %1100 }
0x1e61   :  { %1783 = vmatmul.mubr.msk.bf16.vlgmr.msra.gmra.mrb[20].mxu1 %vm346_vm3, %v1101_v39 }
0x1e62   :  { %1184 = vmatpush1.bf16.msra.mxu1 %v2059_v2  ;;  %1215 = vmatprep.mubr.bf16.mxu1 %v1987_v1 }
0x1e63   :  { %1185 = vmatprep.subr.bf16.mxu1 %v2068_v4 }
0x1e66   :  { %1186 = vmatpush1.bf16.msra.mxu1 %v2080_v7 }
0x1e67   :  { %1187 = vmatprep.subr.bf16.mxu1 %v2086_v8 }
0x1e6a   :  { %1188 = vmatpush1.bf16.msra.mxu1 %v2092_v9 }
0x1e6b   :  { %1189 = vmatprep.subr.bf16.mxu1 %v2098_v10 }
0x1e6e   :  { %1190 = vmatpush1.bf16.msra.mxu1 %v2104_v11 }
0x1e6f   :  { %1794 = vmatprep.subr.bf16.mxu1 %v1989_v13 }
0x1f34   :  { %v1139_v43 = vpop.f32.mrb[20].mxu1 }
0x1f35   :  { %v1140_v44 = vadd.f32 %v1139_v43, %v1068_v24  ;;  %v1784_v45 = vpop.f32.mrb[21].mxu1 }
0x1f36   :  { %v1142_v2 = vpop.f32.mrb[22].mxu1 }
0x1f37   :  { %v1145_v37 = vadd.f32 %v2167_v5, %v1140_v44  ;;  %v1785_v46 = vpop.f32.mrb[23].mxu1 }
0x1f39   :  { %1939 = vtanh.f32 %v1145_v37  ;;  %v1685_v7 = vmul.f32 -1.442695, %v1145_v37 }
0x1f3b   :  { %1941 = vpow2.f32 %v1685_v7 }
0x1f43   :  { %v1940_v4 = vpop.eup %1939 }
0x1f44   :  { %1155 = vrot.lane.b32.xlu1 %v1940_v4, %s1992_s2 }
0x1f45   :  { %v1942_v8 = vpop.eup %1941 }
0x1f46   :  { %v1149_v9 = vadd.f32 1.0, %v1942_v8 }
0x1f48   :  { %1943 = vrcp.f32 %v1149_v9 }
0x1f52   :  { %v1944_v10 = vpop.eup %1943 }
0x1f53   :  { %v1153_v47 = vmul.f32 %v1944_v10, %v2323_v3 }
0x1fb6   :  { %v1156_v11 = vpop.permute.xlu1 %1155 }
0x1fb7   :  { %v1158_v48 = vmul.f32 %v1944_v10, %v1156_v11 }
0x1fb9   :  { %1160 = vrot.lane.b32.xlu0 %v1158_v48, %s1993_s15  ;;  %v218_v48 = vcombine.high %v2122_v42, %v1989_v13 }
0x1fbd   :  { %1171 = vrot.lane.b32.xlu0 %v1097_v36, %s1993_s15 }
0x202b   :  { %v1161_v49 = vpop.permute.xlu0 %1160 }
0x202c   :  { %v2361_v50 = vadd.f32 %v1161_v49, %v1153_v47 }
0x202e   :  { %1945 = vtanh.f32 %v2361_v50 }
0x202f   :  { %v1172_v53 = vpop.permute.xlu0 %1171 }
0x2038   :  { %v1946_v52 = vpop.eup %1945 }
0x2039   :  { %1166 = vrot.lane.b32.xlu1 %v1946_v52, %s1992_s2 }
0x20ab   :  { %v1167_v40 = vpop.permute.xlu1 %1166 }
0x20ac   :  { %v1169_v51 = vmul.f32 %v1944_v10, %v1167_v40 }
0x20ae   :  { %1175 = vrot.lane.b32.xlu1 %v1169_v51, %s1992_s2 }
0x2120   :  { %v1176_v55 = vpop.permute.xlu1 %1175 }
0x2121   :  { %v1178_v56 = vsel %vm346_vm3, %v1172_v53, %v1176_v55 }
0x2122   :  { %v1179_v54 = vpack.c.bf16 %v1178_v56, %v1178_v56 }
0x2124   :  { %1686 = vmatmul.mubr.msk.bf16.vlgmr.msra.gmra.mrb[24].mxu1 %vm260_vm4, %v1179_v54 }
0x2125   :  { %1795 = vmatpush3.bf16.msra.mxu1 %v2133_v58  ;;  %1798 = vmatprep.mubr.msk.bf16.mxu1 %vm1994_vm2, %v1989_v13 }
0x2126   :  { %1796 = vmatprep.subr.bf16.mxu1 %v1989_v13 }
0x2129   :  { %1797 = vmatpush3.bf16.msra.mxu1 %v2143_v59 }
0x212a   :  { %1820 = vmatprep.subr.bf16.mxu1 %v1988_v12 }
0x21f7   :  { %v1217_v60 = vpop.f32.mrb[24].mxu1 }
0x21f8   :  { %v1224_v61 = vadd.f32 %v1217_v60, %v2122_v42  ;;  %v1219_v62 = vpop.f32.mrb[25].mxu1 }
0x21f9   :  { %v1221_v57 = vpop.f32.mrb[26].mxu1 }
0x21fa   :  { %1947 = vtanh.f32 %v1224_v61  ;;  %v1222_v63 = vpop.f32.mrb[27].mxu1  ;;  %v1687_v58 = vmul.f32 -1.442695, %v1224_v61 }
0x21fc   :  { %1949 = vpow2.f32 %v1687_v58 }
0x2204   :  { %v1948_v3 = vpop.eup %1947 }
0x2205   :  { %1234 = vrot.lane.b32.xlu0 %v1948_v3, %s1992_s2 }
0x2206   :  { %v1950_v6 = vpop.eup %1949 }
0x2207   :  { %v1228_v14 = vadd.f32 1.0, %v1950_v6 }
0x2209   :  { %1951 = vrcp.f32 %v1228_v14 }
0x2213   :  { %v1952_v15 = vpop.eup %1951 }
0x2214   :  { %v1232_v18 = vmul.f32 %v1952_v15, %v2341_v28 }
0x2277   :  { %v1235_v16 = vpop.permute.xlu0 %1234 }
0x2278   :  { %v1237_v59 = vmul.f32 %v1952_v15, %v1235_v16 }
0x227a   :  { %1239 = vrot.lane.b32.xlu1 %v1237_v59, %s1993_s15 }
0x22ec   :  { %v1240_v19 = vpop.permute.xlu1 %1239 }
0x22ed   :  { %v2378_v20 = vadd.f32 %v1240_v19, %v1232_v18  ;;  %v1986_v19 = vld [vmem:[%s2473_s5] ss:$0 sm:$0xff] }
0x22ef   :  { %1953 = vtanh.f32 %v2378_v20 }
0x22f9   :  { %v1954_v17 = vpop.eup %1953 }
0x22fa   :  { %1245 = vrot.lane.b32.xlu0 %v1954_v17, %s1992_s2 }
0x236c   :  { %v1246_v22 = vpop.permute.xlu0 %1245 }
0x236d   :  { %v1248_v23 = vmul.f32 %v1952_v15, %v1246_v22 }
0x236f   :  { %v1249_v24 = vpack.c.bf16 %v1248_v23, %v1248_v23 }
0x2371   :  { %1251 = vrot.lane.b32.xlu1 %v1249_v24, %s1993_s15 }
0x23e3   :  { %v1252_v26 = vpop.permute.xlu1 %1251 }
0x23e4   :  { %1791 = vmatmul.mubr.msk.bf16.vlgmr.msra.gmra.mrb[28].mxu0 %vm346_vm3, %v1252_v26 }
0x23e5   :  { %1335 = vmatpush1.bf16.msra.mxu0 %v1979_v21  ;;  %1366 = vmatprep.mubr.bf16.mxu0 %v1987_v1  ;;  %v1984_v1 = vld [vmem:[%s2468_s3 + $0x34] ss:$8 sps:$4 sm:$0xff]  }
0x23e6   :  { %1336 = vmatprep.subr.bf16.mxu0 %v1980_v27 }
0x23e9   :  { %1337 = vmatpush1.bf16.msra.mxu0 %v1981_v29 }
0x23ea   :  { %1338 = vmatprep.subr.bf16.mxu0 %v1982_v30 }
0x23ed   :  { %1339 = vmatpush1.bf16.msra.mxu0 %v1983_v25 }
0x23ee   :  { %1340 = vmatprep.subr.bf16.mxu0 %v1984_v1  ;;  %v1472_v1 = vld [vmem:[%s2474_s6] sm:$0xff] }
0x23f1   :  { %1341 = vmatpush1.bf16.msra.mxu0 %v1985_v31  ;;  %v1473_v31 = vld [vmem:[%s2474_s6 + $0x8] sm:$0xff] }
0x23f2   :  { %1826 = vmatprep.subr.bf16.mxu0 %v1988_v12 }
0x24b7   :  { %v1290_v32 = vpop.f32.mrb[28].mxu0 }
0x24b8   :  { %v1291_v0 = vadd.f32 %v1290_v32, %v1219_v62  ;;  %v1792_v41 = vpop.f32.mrb[29].mxu0  ;;  %v1474_v32 = vld [vmem:[%s2474_s6 + $0x10] sm:$0xff] }
0x24b9   :  { %v1293_v33 = vpop.f32.mrb[30].mxu0  ;;  %v1475_v41 = vld [vmem:[%s2474_s6 + $0x18] sm:$0xff] }
0x24ba   :  { %v1296_v28 = vadd.f32 %v2167_v5, %v1291_v0  ;;  %v1793_v34 = vpop.f32.mrb[31].mxu0  ;;  %v1821_v0 = vpack.c.bf16 %v1473_v31, %v1472_v1  ;;  %v1824_v33 = vpack.c.bf16 %v1475_v41, %v1474_v32 }
0x24bb   :  { %v1559_v34 = vld [vmem:[%s2475_s8] sm:$0xff] }
0x24bc   :  { %1955 = vtanh.f32 %v1296_v28  ;;  %v1689_v36 = vmul.f32 -1.442695, %v1296_v28 }
0x24be   :  { %1957 = vpow2.f32 %v1689_v36 }
0x24c6   :  { %v1956_v35 = vpop.eup %1955 }
0x24c7   :  { %1306 = vrot.lane.b32.xlu0 %v1956_v35, %s1992_s2  ;;  %v1560_v35 = vld [vmem:[%s2475_s8 + $0x8] sm:$0xff] }
0x24c8   :  { %v1958_v38 = vpop.eup %1957  ;;  %v1827_v36 = vpack.c.bf16 %v1560_v35, %v1559_v34 }
0x24c9   :  { %v1300_v39 = vadd.f32 1.0, %v1958_v38 }
0x24cb   :  { %1959 = vrcp.f32 %v1300_v39 }
0x24d5   :  { %v1960_v43 = vpop.eup %1959 }
0x24d6   :  { %v1304_v2 = vmul.f32 %v1960_v43, %v2361_v50 }
0x2539   :  { %v1307_v44 = vpop.permute.xlu0 %1306 }
0x253a   :  { %v1309_v45 = vmul.f32 %v1960_v43, %v1307_v44  ;;  %v1694_v44 = vld [vmem:[%s2477_s7] ss:$0 sm:$0xff] }
0x253c   :  { %1311 = vrot.lane.b32.xlu1 %v1309_v45, %s1993_s15 }
0x2540   :  { %1322 = vrot.lane.b32.xlu1 %v1248_v23, %s1993_s15 }
0x25ae   :  { %v1312_v5 = vpop.permute.xlu1 %1311 }
0x25af   :  { %v2412_v37 = vadd.f32 %v1312_v5, %v1304_v2 }
0x25b1   :  { %1961 = vtanh.f32 %v2412_v37 }
0x25b2   :  { %v1323_v8 = vpop.permute.xlu1 %1322 }
0x25bb   :  { %v1962_v46 = vpop.eup %1961 }
0x25bc   :  { %1317 = vrot.lane.b32.xlu0 %v1962_v46, %s1992_s2 }
0x262e   :  { %v1318_v4 = vpop.permute.xlu0 %1317 }
0x262f   :  { %v1320_v7 = vmul.f32 %v1960_v43, %v1318_v4 }
0x2631   :  { %1326 = vrot.lane.b32.xlu0 %v1320_v7, %s1992_s2 }
0x26a3   :  { %v1327_v9 = vpop.permute.xlu0 %1326 }
0x26a4   :  { %v1329_v10 = vsel %vm346_vm3, %v1323_v8, %v1327_v9 }
0x26a5   :  { %v1330_v11 = vpack.c.bf16 %v1329_v10, %v1329_v10 }
0x26a7   :  { %1690 = vmatmul.mubr.msk.bf16.vlgmr.msra.gmra.mrb[32].mxu0 %vm260_vm4, %v1330_v11 }
0x26a8   :  { %1817 = vmatprep.mubr.msk.f32.mxu0 %vm1994_vm2, %v1989_v13  ;;  %1828 = vmatpush3.bf16.msra.mxu0 %v1827_v36 }
0x277a   :  { %v1368_v47 = vpop.f32.mrb[32].mxu0 }
0x277b   :  { %v1375_v49 = vadd.f32 %v1368_v47, %v218_v48  ;;  %v1370_v50 = vpop.f32.mrb[33].mxu0 }
0x277c   :  { %v1372_v52 = vpop.f32.mrb[34].mxu0 }
0x277d   :  { %1963 = vtanh.f32 %v1375_v49  ;;  %v1373_v40 = vpop.f32.mrb[35].mxu0  ;;  %v1691_v53 = vmul.f32 -1.442695, %v1375_v49 }
0x277f   :  { %1965 = vpow2.f32 %v1691_v53 }
0x2787   :  { %v1964_v51 = vpop.eup %1963 }
0x2788   :  { %1385 = vrot.lane.b32.xlu1 %v1964_v51, %s1992_s2 }
0x2789   :  { %v1966_v55 = vpop.eup %1965 }
0x278a   :  { %v1379_v56 = vadd.f32 1.0, %v1966_v55 }
0x278c   :  { %1967 = vrcp.f32 %v1379_v56 }
0x2796   :  { %v1968_v54 = vpop.eup %1967 }
0x2797   :  { %v1383_v42 = vmul.f32 %v1968_v54, %v2378_v20 }
0x27fa   :  { %v1386_v60 = vpop.permute.xlu1 %1385 }
0x27fb   :  { %v1388_v61 = vmul.f32 %v1968_v54, %v1386_v60 }
0x27fd   :  { %1390 = vrot.lane.b32.xlu0 %v1388_v61, %s1993_s15 }
0x286f   :  { %v1391_v62 = vpop.permute.xlu0 %1390 }
0x2870   :  { %v1393_v57 = vadd.f32 %v1391_v62, %v1383_v42 }
0x2872   :  { %1969 = vtanh.f32 %v1393_v57 }
0x287c   :  { %v1970_v63 = vpop.eup %1969 }
0x287d   :  { %1396 = vrot.lane.b32.xlu1 %v1970_v63, %s1992_s2 }
0x28ef   :  { %v1397_v3 = vpop.permute.xlu1 %1396 }
0x28f0   :  { %v1399_v58 = vmul.f32 %v1968_v54, %v1397_v3 }
0x28f2   :  { %v1400_v6 = vpack.c.bf16 %v1399_v58, %v1399_v58 }
0x28f4   :  { %1402 = vrot.lane.b32.xlu0 %v1400_v6, %s1993_s15 }
0x2966   :  { %v1403_v14 = vpop.permute.xlu0 %1402 }
0x2967   :  { %1799 = vmatmul.mubr.msk.bf16.vlgmr.msra.gmra.mrb[28].mxu1 %vm346_vm3, %v1403_v14 }
0x2968   :  { %1810 = vmatprep.mubr.msk.f32.mxu1 %vm1994_vm2, %v1989_v13  ;;  %1822 = vmatpush3.bf16.msra.mxu1 %v1821_v0 }
0x2969   :  { %1823 = vmatprep.subr.bf16.mxu1 %v1988_v12  ;;  %v15_v12 = vstv %s2476_s9 }
0x296a   :  { %16 = vst [vmem:[#allocation2] sm:$0x1] %v15_v12 }
0x296c   :  { %1825 = vmatpush3.bf16.msra.mxu1 %v1824_v33 }
0x2971   :  { %v1696_v46 = vld [vmem:[#allocation2] ss:$0 sm:$0xff] }
0x2a3a   :  { %v1441_v15 = vpop.f32.mrb[28].mxu1 }
0x2a3b   :  { %v1442_v16 = vadd.f32 %v1441_v15, %v1370_v50  ;;  %v1800_v59 = vpop.f32.mrb[29].mxu1 }
0x2a3c   :  { %v1444_v18 = vpop.f32.mrb[30].mxu1 }
0x2a3d   :  { %v1447_v20 = vadd.f32 %v1986_v19, %v1442_v16  ;;  %v1801_v17 = vpop.f32.mrb[31].mxu1 }
0x2a3f   :  { %1971 = vtanh.f32 %v1447_v20  ;;  %v1693_v23 = vmul.f32 -1.442695, %v1447_v20 }
0x2a41   :  { %1973 = vpow2.f32 %v1693_v23 }
0x2a49   :  { %v1972_v22 = vpop.eup %1971 }
0x2a4a   :  { %1457 = vrot.lane.b32.xlu1 %v1972_v22, %s1992_s2 }
0x2a4b   :  { %v1974_v24 = vpop.eup %1973 }
0x2a4c   :  { %v1451_v26 = vadd.f32 1.0, %v1974_v24 }
0x2a4e   :  { %1975 = vrcp.f32 %v1451_v26 }
0x2a58   :  { %v1976_v13 = vpop.eup %1975 }
0x2a59   :  { %v1455_v29 = vmul.f32 %v1976_v13, %v2412_v37 }
0x2abc   :  { %v1458_v21 = vpop.permute.xlu1 %1457 }
0x2abd   :  { %v1460_v27 = vmul.f32 %v1976_v13, %v1458_v21 }
0x2abf   :  { %1462 = vrot.lane.b32.xlu0 %v1460_v27, %s1993_s15 }
0x2b31   :  { %v1463_v30 = vpop.permute.xlu0 %1462 }
0x2b32   :  { %v1465_v25 = vadd.f32 %v1463_v30, %v1455_v29 }
0x2b34   :  { %1977 = vtanh.f32 %v1465_v25 }
0x2b3e   :  { %v1978_v28 = vpop.eup %1977 }
0x2b3f   :  { %1468 = vrot.lane.b32.xlu1 %v1978_v28, %s1992_s2 }
0x2bb1   :  { %v1469_v38 = vpop.permute.xlu1 %1468 }
0x2bb2   :  { %v1471_v39 = vmul.f32 %v1976_v13, %v1469_v38 }
0x2bb4   :  { %1484 = vrot.lane.b32.xlu0 %v1471_v39, %s1993_s15 }
0x2c26   :  { %v1485_v43 = vpop.permute.xlu0 %1484 }
0x2c27   :  { %1811 = vmatmul.mubr.msk.f32.vlgmr.msra.gmra.mrb[32].mxu1 %vm346_vm3, %v1485_v43 }
0x2cfa   :  { %v1554_v45 = vpop.f32.mrb[32].mxu1 }
0x2cfb   :  { %v1555_v2 = vadd.f32 %v1694_v44, %v1554_v45  ;;  %v1812_v5 = vpop.f32.mrb[33].mxu1 }
0x2cfd   :  { %v1558_v37 = vmax.f32 %v1555_v2, 0.0 }
0x2cff   :  { %1818 = vmatmul.mubr.msk.f32.vlgmr.msra.gmra.mrb[2].mxu0 %vm1568_vm5, %v1558_v37 }
0x2dd2   :  { %v1638_v4 = vpop.f32.mrb[2].mxu0 }
0x2dd3   :  { %v1639_v7 = vadd.f32 %v1696_v46, %v1638_v4  ;;  %v1819_v8 = vpop.f32.mrb[3].mxu0 }
0x2dd5   :  { %1643 = vst.msk [vmem:[%s2478_s10] sm:$0x3] %vm1642_vm6, %v1639_v7 }

</bundles_post_ra>
